<compile_context>
chip_gen: v5e
topology: v5e:2x2
jax: 0.10.0
libtpu: 0.0.40
codegen_flags: <defaults>
</compile_context>

<pallas_src>
import functools
import math

import jax
import jax.numpy as jnp
from jax.experimental import pallas as pl
from jax.experimental.pallas import tpu as pltpu


# ---------------------------------------------------------------------------
# small helpers
# ---------------------------------------------------------------------------

def _gelu_tanh(x):
    c = math.sqrt(2.0 / math.pi)
    return 0.5 * x * (1.0 + jnp.tanh(c * (x + 0.044715 * x * x * x)))


def _pick_row_tile(rows):
    # Full block when small (block == array extent is always legal); otherwise a
    # 512-row tile (multiple of 8) keeps each double-buffered input well under VMEM.
    return rows if rows <= 512 else 512


def _pad_rows(x2, tile):
    rows = x2.shape[0]
    padded = pl.cdiv(rows, tile) * tile
    if padded == rows:
        return x2, rows
    return jnp.pad(x2, ((0, padded - rows), (0, 0))), rows


# ---------------------------------------------------------------------------
# Pallas kernels
# ---------------------------------------------------------------------------

def _make_linear_kernel(has_bias, has_residual, activation):
    def kernel(*refs):
        it = iter(refs)
        x_ref = next(it)
        w_ref = next(it)
        b_ref = next(it) if has_bias else None
        r_ref = next(it) if has_residual else None
        o_ref = next(it)

        acc = jnp.dot(x_ref[...], w_ref[...], preferred_element_type=jnp.float32)
        if has_bias:
            acc = acc + b_ref[...].astype(jnp.float32)
        if activation == "gelu":
            acc = _gelu_tanh(acc)
        if has_residual:
            acc = acc + r_ref[...].astype(jnp.float32)
        o_ref[...] = acc.astype(o_ref.dtype)

    return kernel


def pallas_linear(x2, w, b=None, residual=None, activation=None):
    """out = act(x2 @ w + b) (+ residual).  x2: (R, K), w: (K, N)."""
    R, K = x2.shape
    K2, N = w.shape
    assert K == K2
    tile = _pick_row_tile(R)
    xp, rows = _pad_rows(x2, tile)
    Rp = xp.shape[0]

    in_specs = [
        pl.BlockSpec((tile, K), lambda i: (i, 0)),
        pl.BlockSpec((K, N), lambda i: (0, 0)),
    ]
    args = [xp, w]
    if b is not None:
        in_specs.append(pl.BlockSpec((1, N), lambda i: (0, 0)))
        args.append(b.reshape(1, N))
    if residual is not None:
        rp, _ = _pad_rows(residual, tile)
        in_specs.append(pl.BlockSpec((tile, N), lambda i: (i, 0)))
        args.append(rp)

    out = pl.pallas_call(
        _make_linear_kernel(b is not None, residual is not None, activation),
        out_shape=jax.ShapeDtypeStruct((Rp, N), x2.dtype),
        grid_spec=pltpu.PrefetchScalarGridSpec(
            num_scalar_prefetch=0,
            grid=(Rp // tile,),
            in_specs=in_specs,
            out_specs=pl.BlockSpec((tile, N), lambda i: (i, 0)),
        ),
        compiler_params=pltpu.CompilerParams(dimension_semantics=("parallel",)),
        cost_estimate=pl.CostEstimate(
            flops=2 * Rp * K * N,
            transcendentals=Rp * N if activation == "gelu" else 0,
            bytes_accessed=4 * (Rp * K + K * N + 2 * Rp * N),
        ),
    )(*args)
    return out[:rows] if rows != Rp else out


def _layernorm_kernel(x_ref, g_ref, b_ref, o_ref):
    x = x_ref[...].astype(jnp.float32)
    mean = jnp.mean(x, axis=-1, keepdims=True)
    xc = x - mean
    var = jnp.mean(xc * xc, axis=-1, keepdims=True)
    inv = jax.lax.rsqrt(var + 1e-5)
    y = xc * inv * g_ref[...].astype(jnp.float32) + b_ref[...].astype(jnp.float32)
    o_ref[...] = y.astype(o_ref.dtype)


def pallas_layernorm(x2, gamma, beta):
    R, D = x2.shape
    tile = _pick_row_tile(R)
    xp, rows = _pad_rows(x2, tile)
    Rp = xp.shape[0]
    out = pl.pallas_call(
        _layernorm_kernel,
        out_shape=jax.ShapeDtypeStruct((Rp, D), x2.dtype),
        grid_spec=pltpu.PrefetchScalarGridSpec(
            num_scalar_prefetch=0,
            grid=(Rp // tile,),
            in_specs=[
                pl.BlockSpec((tile, D), lambda i: (i, 0)),
                pl.BlockSpec((1, D), lambda i: (0, 0)),
                pl.BlockSpec((1, D), lambda i: (0, 0)),
            ],
            out_specs=pl.BlockSpec((tile, D), lambda i: (i, 0)),
        ),
        compiler_params=pltpu.CompilerParams(dimension_semantics=("parallel",)),
    )(xp, gamma.reshape(1, D), beta.reshape(1, D))
    return out[:rows] if rows != Rp else out


def _attention_kernel(q_ref, k_ref, v_ref, o_ref, *, scale):
    q = q_ref[...].astype(jnp.float32)           # (1, nq, dh)
    k = k_ref[...].astype(jnp.float32)           # (1, nk, dh)
    v = v_ref[...].astype(jnp.float32)           # (1, nk, dh)
    s = jnp.einsum("bqd,bkd->bqk", q, k, preferred_element_type=jnp.float32) * scale
    m = jnp.max(s, axis=-1, keepdims=True)
    p = jnp.exp(s - m)
    denom = jnp.sum(p, axis=-1, keepdims=True)
    o = jnp.einsum("bqk,bkd->bqd", p, v, preferred_element_type=jnp.float32) / denom
    o_ref[...] = o.astype(o_ref.dtype)


def pallas_attention(q, k, v, scale):
    """Fused softmax attention.  q: (BH, nq, dh); k, v: (BH, nk, dh)."""
    BH, nq, dh = q.shape
    _, nk, _ = k.shape
    kernel = functools.partial(_attention_kernel, scale=scale)
    return pl.pallas_call(
        kernel,
        out_shape=jax.ShapeDtypeStruct((BH, nq, dh), q.dtype),
        grid_spec=pltpu.PrefetchScalarGridSpec(
            num_scalar_prefetch=0,
            grid=(BH,),
            in_specs=[
                pl.BlockSpec((1, nq, dh), lambda i: (i, 0, 0)),
                pl.BlockSpec((1, nk, dh), lambda i: (i, 0, 0)),
                pl.BlockSpec((1, nk, dh), lambda i: (i, 0, 0)),
            ],
            out_specs=pl.BlockSpec((1, nq, dh), lambda i: (i, 0, 0)),
        ),
        compiler_params=pltpu.CompilerParams(dimension_semantics=("parallel",)),
    )(q, k, v)


def _add_pos_kernel(x_ref, p_ref, o_ref):
    o_ref[...] = (x_ref[...] + p_ref[...]).astype(o_ref.dtype)


def pallas_add_pos(kv, pos):
    """kv: (B, N, D);  pos: (1, N, D) broadcast over batch."""
    B, N, D = kv.shape
    return pl.pallas_call(
        _add_pos_kernel,
        out_shape=jax.ShapeDtypeStruct((B, N, D), kv.dtype),
        grid_spec=pltpu.PrefetchScalarGridSpec(
            num_scalar_prefetch=0,
            grid=(B,),
            in_specs=[
                pl.BlockSpec((1, N, D), lambda i: (i, 0, 0)),
                pl.BlockSpec((1, N, D), lambda i: (0, 0, 0)),
            ],
            out_specs=pl.BlockSpec((1, N, D), lambda i: (i, 0, 0)),
        ),
        compiler_params=pltpu.CompilerParams(dimension_semantics=("parallel",)),
    )(kv, pos)


# ---------------------------------------------------------------------------
# model blocks built from the kernels
# ---------------------------------------------------------------------------

def _split_heads(x, heads):
    b, n, hd = x.shape
    dh = hd // heads
    return x.reshape(b, n, heads, dh).transpose(0, 2, 1, 3).reshape(b * heads, n, dh)


def _merge_heads(x, b, heads):
    bh, n, dh = x.shape
    return x.reshape(b, heads, n, dh).transpose(0, 2, 1, 3).reshape(b, n, heads * dh)


def self_attention_block(x, p, heads, dim_head):
    """kv = PreNorm(Attention)(kv) + kv  (extra torch kwargs 'name'/'name_didi' are ignored)."""
    b, n, d = x.shape
    inner = heads * dim_head
    x2 = x.reshape(b * n, d)
    h = pallas_layernorm(x2, p["ln_g"], p["ln_b"])
    qkv = pallas_linear(h, p["w_qkv"]).reshape(b, n, 3 * inner)
    q, k, v = jnp.split(qkv, 3, axis=-1)
    oh = pallas_attention(_split_heads(q, heads), _split_heads(k, heads),
                          _split_heads(v, heads), dim_head ** -0.5)
    o = _merge_heads(oh, b, heads).reshape(b * n, inner)
    out = pallas_linear(o, p["w_out"], p["b_out"], residual=x2)
    return out.reshape(b, n, d)


def feedforward_block(x, p):
    """x = PreNorm(FeedForward)(x) + x  (Linear-GELU-Linear; Dropout p=0 -> identity)."""
    b, n, d = x.shape
    x2 = x.reshape(b * n, d)
    h = pallas_layernorm(x2, p["ln_g"], p["ln_b"])
    h = pallas_linear(h, p["w1"], p["b1"], activation="gelu")
    out = pallas_linear(h, p["w2"], p["b2"], residual=x2)
    return out.reshape(b, n, d)


def cross_attention_block(q_1, kv, p, heads, dim_head):
    """q_1 = Cross_Attention(q_1, kv) + q_1  (q from q_1, k/v from kv)."""
    b, nq, d = q_1.shape
    _, nk, _ = kv.shape
    inner = heads * dim_head
    q2 = q_1.reshape(b * nq, d)
    kv2 = kv.reshape(b * nk, d)
    q = pallas_linear(q2, p["w_q"]).reshape(b, nq, inner)
    k = pallas_linear(kv2, p["w_k"]).reshape(b, nk, inner)
    v = pallas_linear(kv2, p["w_v"]).reshape(b, nk, inner)
    oh = pallas_attention(_split_heads(q, heads), _split_heads(k, heads),
                          _split_heads(v, heads), dim_head ** -0.5)
    o = _merge_heads(oh, b, heads).reshape(b * nq, inner)
    out = pallas_linear(o, p["w_out"], p["b_out"], residual=q2)
    return out.reshape(b, nq, d)


def cross_transformer_forward(params, q_1, kv, *, heads, dim_head):
    kv = pallas_add_pos(kv, params["pos_embedding"])
    # nn.Dropout(p=0.0) -> identity.
    for layer in params["layers"]:
        kv = self_attention_block(kv, layer["attn"], heads, dim_head)
        kv = feedforward_block(kv, layer["ff1"])
        q_1 = cross_attention_block(q_1, kv, layer["cattn"], heads, dim_head)
        q_1 = feedforward_block(q_1, layer["ff"])
    return q_1


# ---------------------------------------------------------------------------
# parameter init (deterministic, torch-Linear-style uniform init)
# ---------------------------------------------------------------------------

def _init_linear(key, fan_in, fan_out, bias=True):
    kw, kb = jax.random.split(key)
    bound = 1.0 / math.sqrt(fan_in)
    w = jax.random.uniform(kw, (fan_in, fan_out), jnp.float32, -bound, bound)
    if bias:
        b = jax.random.uniform(kb, (fan_out,), jnp.float32, -bound, bound)
        return w, b
    return w, None


def init_params(key, *, dim, depth, heads, dim_head, mlp_dim, words):
    inner = heads * dim_head
    k_pos, k_layers = jax.random.split(key)
    params = {
        "pos_embedding": jax.random.normal(k_pos, (1, words, dim), jnp.float32),
        "layers": [],
    }
    ones = jnp.ones((dim,), jnp.float32)
    zeros = jnp.zeros((dim,), jnp.float32)
    for lkey in jax.random.split(k_layers, depth):
        ks = jax.random.split(lkey, 10)
        w_qkv, _ = _init_linear(ks[0], dim, 3 * inner, bias=False)
        w_ao, b_ao = _init_linear(ks[1], inner, dim)
        w_q, _ = _init_linear(ks[2], dim, inner, bias=False)
        w_k, _ = _init_linear(ks[3], dim, inner, bias=False)
        w_v, _ = _init_linear(ks[4], dim, inner, bias=False)
        w_co, b_co = _init_linear(ks[5], inner, dim)
        f1w1, f1b1 = _init_linear(ks[6], dim, mlp_dim)
        f1w2, f1b2 = _init_linear(ks[7], mlp_dim, dim)
        fw1, fb1 = _init_linear(ks[8], dim, mlp_dim)
        fw2, fb2 = _init_linear(ks[9], mlp_dim, dim)
        params["layers"].append({
            "attn": {"ln_g": ones, "ln_b": zeros, "w_qkv": w_qkv,
                     "w_out": w_ao, "b_out": b_ao},
            "ff1": {"ln_g": ones, "ln_b": zeros,
                    "w1": f1w1, "b1": f1b1, "w2": f1w2, "b2": f1b2},
            "cattn": {"w_q": w_q, "w_k": w_k, "w_v": w_v,
                      "w_out": w_co, "b_out": b_co},
            "ff": {"ln_g": ones, "ln_b": zeros,
                   "w1": fw1, "b1": fb1, "w2": fw2, "b2": fb2},
        })
    return params


# ---------------------------------------------------------------------------
# pure-JAX reference (same math, no Pallas) for correctness checking
# ---------------------------------------------------------------------------

def _ref_layernorm(x, g, b):
    mean = jnp.mean(x, -1, keepdims=True)
    var = jnp.mean((x - mean) ** 2, -1, keepdims=True)
    return (x - mean) * jax.lax.rsqrt(var + 1e-5) * g + b


def _ref_split_heads(t, heads):
    b, n, hd = t.shape
    return t.reshape(b, n, heads, hd // heads).transpose(0, 2, 1, 3)


def _ref_merge_heads(t):
    b, h, n, dh = t.shape
    return t.transpose(0, 2, 1, 3).reshape(b, n, h * dh)


def _ref_attention(q, k, v, scale):
    s = jnp.einsum("bhqd,bhkd->bhqk", q, k) * scale
    return jnp.einsum("bhqk,bhkd->bhqd", jax.nn.softmax(s, axis=-1), v)


def reference_forward(params, q_1, kv, *, heads, dim_head):
    scale = dim_head ** -0.5
    kv = kv + params["pos_embedding"]
    for layer in params["layers"]:
        p = layer["attn"]
        h = _ref_layernorm(kv, p["ln_g"], p["ln_b"])
        q, k, v = jnp.split(h @ p["w_qkv"], 3, axis=-1)
        o = _ref_attention(_ref_split_heads(q, heads), _ref_split_heads(k, heads),
                           _ref_split_heads(v, heads), scale)
        kv = _ref_merge_heads(o) @ p["w_out"] + p["b_out"] + kv

        p = layer["ff1"]
        h = _ref_layernorm(kv, p["ln_g"], p["ln_b"])
        kv = _gelu_tanh(h @ p["w1"] + p["b1"]) @ p["w2"] + p["b2"] + kv

        p = layer["cattn"]
        o = _ref_attention(_ref_split_heads(q_1 @ p["w_q"], heads),
                           _ref_split_heads(kv @ p["w_k"], heads),
                           _ref_split_heads(kv @ p["w_v"], heads), scale)
        q_1 = _ref_merge_heads(o) @ p["w_out"] + p["b_out"] + q_1

        p = layer["ff"]
        h = _ref_layernorm(q_1, p["ln_g"], p["ln_b"])
        q_1 = _gelu_tanh(h @ p["w1"] + p["b1"]) @ p["w2"] + p["b2"] + q_1
    return q_1


# ---------------------------------------------------------------------------
# demo
# ---------------------------------------------------------------------------

if __name__ == "__main__":
    key = jax.random.PRNGKey(0)
    k_params, k_q, k_kv = jax.random.split(key, 3)

    batch, words, dim = 2, 8, 32
    depth, heads, dim_head, mlp_dim = 2, 4, 8, 64
    n_q = 8

    params = init_params(k_params, dim=dim, depth=depth, heads=heads,
                         dim_head=dim_head, mlp_dim=mlp_dim, words=words)
    q_1 = jax.random.normal(k_q, (batch, n_q, dim), jnp.float32)
    kv = jax.random.normal(k_kv, (batch, words, dim), jnp.float32)

    forward = jax.jit(functools.partial(cross_transformer_forward,
                                        heads=heads, dim_head=dim_head))
    out = jax.block_until_ready(forward(params, q_1, kv))

    with jax.default_matmul_precision("highest"):
        ref = jax.block_until_ready(
            reference_forward(params, q_1, kv, heads=heads, dim_head=dim_head))

    assert out.shape == (batch, n_q, dim)
    assert bool(jnp.all(jnp.isfinite(out)))
    max_err = float(jnp.max(jnp.abs(out - ref)))
    assert bool(jnp.allclose(out, ref, rtol=1e-2, atol=1e-2)), f"max abs err {max_err}"

    print("KERNEL_OK")
</pallas_src>

<mosaic_0001>
module attributes {stable_mosaic.version = 11 : i64} {
  func.func @_layernorm_kernel(%arg0: i32, %arg1: memref<16x32xf32, #tpu.memory_space<vmem>>, %arg2: memref<1x32xf32, #tpu.memory_space<vmem>>, %arg3: memref<1x32xf32, #tpu.memory_space<vmem>>, %arg4: memref<16x32xf32, #tpu.memory_space<vmem>>) attributes {dimension_semantics = [#tpu.dimension_semantics<parallel>], iteration_bounds = array<i64: 1>, scalar_prefetch = 0 : i64, scratch_operands = 0 : i64, tpu.core_type = #tpu.core_type<tc>, window_params = [{transform_indices = @transform_0, window_bounds = array<i64: 16, 32>}, {pipeline_mode = #tpu.pipeline_mode<synchronous>, transform_indices = @transform_1, window_bounds = array<i64: 1, 32>}, {pipeline_mode = #tpu.pipeline_mode<synchronous>, transform_indices = @transform_2, window_bounds = array<i64: 1, 32>}, {transform_indices = @transform_3, window_bounds = array<i64: 16, 32>}]} {
    %c0 = arith.constant 0 : index
    %c0_0 = arith.constant 0 : index
    %0 = vector.load %arg1[%c0, %c0_0] : memref<16x32xf32, #tpu.memory_space<vmem>>, vector<16x32xf32>
    %cst = arith.constant dense<0.000000e+00> : vector<16xf32>
    %1 = vector.multi_reduction <add>, %0, %cst [1] : vector<16x32xf32> to vector<16xf32>
    %2 = vector.shape_cast %1 : vector<16xf32> to vector<16x1xf32>
    %cst_1 = arith.constant 3.200000e+01 : f32
    %3 = vector.broadcast %cst_1 : f32 to vector<16x1xf32>
    %4 = arith.divf %2, %3 : vector<16x1xf32>
    %5 = vector.broadcast %4 : vector<16x1xf32> to vector<16x32xf32>
    %6 = arith.subf %0, %5 : vector<16x32xf32>
    %7 = arith.mulf %6, %6 : vector<16x32xf32>
    %cst_2 = arith.constant dense<0.000000e+00> : vector<16xf32>
    %8 = vector.multi_reduction <add>, %7, %cst_2 [1] : vector<16x32xf32> to vector<16xf32>
    %9 = vector.shape_cast %8 : vector<16xf32> to vector<16x1xf32>
    %cst_3 = arith.constant 3.200000e+01 : f32
    %10 = vector.broadcast %cst_3 : f32 to vector<16x1xf32>
    %11 = arith.divf %9, %10 : vector<16x1xf32>
    %cst_4 = arith.constant 9.99999974E-6 : f32
    %12 = vector.broadcast %cst_4 : f32 to vector<16x1xf32>
    %13 = arith.addf %11, %12 : vector<16x1xf32>
    %14 = math.rsqrt %13 : vector<16x1xf32>
    %15 = vector.broadcast %14 : vector<16x1xf32> to vector<16x32xf32>
    %16 = arith.mulf %6, %15 : vector<16x32xf32>
    %c0_5 = arith.constant 0 : index
    %c0_6 = arith.constant 0 : index
    %17 = vector.load %arg2[%c0_5, %c0_6] : memref<1x32xf32, #tpu.memory_space<vmem>>, vector<1x32xf32>
    %18 = vector.broadcast %17 : vector<1x32xf32> to vector<16x32xf32>
    %19 = arith.mulf %16, %18 : vector<16x32xf32>
    %c0_7 = arith.constant 0 : index
    %c0_8 = arith.constant 0 : index
    %20 = vector.load %arg3[%c0_7, %c0_8] : memref<1x32xf32, #tpu.memory_space<vmem>>, vector<1x32xf32>
    %21 = vector.broadcast %20 : vector<1x32xf32> to vector<16x32xf32>
    %22 = arith.addf %19, %21 : vector<16x32xf32>
    %c0_9 = arith.constant 0 : index
    %c0_10 = arith.constant 0 : index
    %23 = vector.load %arg4[%c0_9, %c0_10] : memref<16x32xf32, #tpu.memory_space<vmem>>, vector<16x32xf32>
    tpu.vector_store %arg4[%c0_9, %c0_10], %22 {strides = array<i32>} : memref<16x32xf32, #tpu.memory_space<vmem>>, vector<16x32xf32>,
    return
  }
  func.func @transform_0(%arg0: i32) -> (i32, i32) {
    %c0_i32 = arith.constant 0 : i32
    %c0_i32_0 = arith.constant 0 : i32
    return %arg0, %c0_i32 : i32, i32
  }
  func.func @transform_1(%arg0: i32) -> (i32, i32) {
    %c0_i32 = arith.constant 0 : i32
    %c0_i32_0 = arith.constant 0 : i32
    %c0_i32_1 = arith.constant 0 : i32
    return %c0_i32, %c0_i32_0 : i32, i32
  }
  func.func @transform_2(%arg0: i32) -> (i32, i32) {
    %c0_i32 = arith.constant 0 : i32
    %c0_i32_0 = arith.constant 0 : i32
    %c0_i32_1 = arith.constant 0 : i32
    return %c0_i32, %c0_i32_0 : i32, i32
  }
  func.func @transform_3(%arg0: i32) -> (i32, i32) {
    %c0_i32 = arith.constant 0 : i32
    %c0_i32_0 = arith.constant 0 : i32
    return %arg0, %c0_i32 : i32, i32
  }
}

module attributes {stable_mosaic.version = 11 : i64} {
  func.func @_add_pos_kernel(%arg0: i32, %arg1: memref<1x8x32xf32, #tpu.memory_space<vmem>>, %arg2: memref<1x8x32xf32, #tpu.memory_space<vmem>>, %arg3: memref<1x8x32xf32, #tpu.memory_space<vmem>>) attributes {dimension_semantics = [#tpu.dimension_semantics<parallel>], iteration_bounds = array<i64: 2>, scalar_prefetch = 0 : i64, scratch_operands = 0 : i64, tpu.core_type = #tpu.core_type<tc>, window_params = [{transform_indices = @transform_0, window_bounds = array<i64: 1, 8, 32>}, {pipeline_mode = #tpu.pipeline_mode<synchronous>, transform_indices = @transform_1, window_bounds = array<i64: 1, 8, 32>}, {transform_indices = @transform_2, window_bounds = array<i64: 1, 8, 32>}]} {
    %c0 = arith.constant 0 : index
    %c0_0 = arith.constant 0 : index
    %c0_1 = arith.constant 0 : index
    %0 = vector.load %arg1[%c0, %c0_0, %c0_1] : memref<1x8x32xf32, #tpu.memory_space<vmem>>, vector<1x8x32xf32>
    %c0_2 = arith.constant 0 : index
    %c0_3 = arith.constant 0 : index
    %c0_4 = arith.constant 0 : index
    %1 = vector.load %arg2[%c0_2, %c0_3, %c0_4] : memref<1x8x32xf32, #tpu.memory_space<vmem>>, vector<1x8x32xf32>
    %2 = arith.addf %0, %1 : vector<1x8x32xf32>
    %c0_5 = arith.constant 0 : index
    %c0_6 = arith.constant 0 : index
    %c0_7 = arith.constant 0 : index
    %3 = vector.load %arg3[%c0_5, %c0_6, %c0_7] : memref<1x8x32xf32, #tpu.memory_space<vmem>>, vector<1x8x32xf32>
    tpu.vector_store %arg3[%c0_5, %c0_6, %c0_7], %2 {strides = array<i32>} : memref<1x8x32xf32, #tpu.memory_space<vmem>>, vector<1x8x32xf32>,
    return
  }
  func.func @transform_0(%arg0: i32) -> (i32, i32, i32) {
    %c0_i32 = arith.constant 0 : i32
    %c0_i32_0 = arith.constant 0 : i32
    %c0_i32_1 = arith.constant 0 : i32
    return %arg0, %c0_i32, %c0_i32_0 : i32, i32, i32
  }
  func.func @transform_1(%arg0: i32) -> (i32, i32, i32) {
    %c0_i32 = arith.constant 0 : i32
    %c0_i32_0 = arith.constant 0 : i32
    %c0_i32_1 = arith.constant 0 : i32
    %c0_i32_2 = arith.constant 0 : i32
    return %c0_i32, %c0_i32_0, %c0_i32_1 : i32, i32, i32
  }
  func.func @transform_2(%arg0: i32) -> (i32, i32, i32) {
    %c0_i32 = arith.constant 0 : i32
    %c0_i32_0 = arith.constant 0 : i32
    %c0_i32_1 = arith.constant 0 : i32
    return %arg0, %c0_i32, %c0_i32_0 : i32, i32, i32
  }
}

module attributes {stable_mosaic.version = 11 : i64} {
  func.func @kernel(%arg0: i32, %arg1: memref<16x32xf32, #tpu.memory_space<vmem>>, %arg2: memref<32x96xf32, #tpu.memory_space<vmem>>, %arg3: memref<16x96xf32, #tpu.memory_space<vmem>>) attributes {dimension_semantics = [#tpu.dimension_semantics<parallel>], iteration_bounds = array<i64: 1>, scalar_prefetch = 0 : i64, scratch_operands = 0 : i64, tpu.core_type = #tpu.core_type<tc>, window_params = [{transform_indices = @transform_0, window_bounds = array<i64: 16, 32>}, {pipeline_mode = #tpu.pipeline_mode<synchronous>, transform_indices = @transform_1, window_bounds = array<i64: 32, 96>}, {transform_indices = @transform_2, window_bounds = array<i64: 16, 96>}]} {
    %c0 = arith.constant 0 : index
    %c0_0 = arith.constant 0 : index
    %0 = vector.load %arg1[%c0, %c0_0] : memref<16x32xf32, #tpu.memory_space<vmem>>, vector<16x32xf32>
    %c0_1 = arith.constant 0 : index
    %c0_2 = arith.constant 0 : index
    %1 = vector.load %arg2[%c0_1, %c0_2] : memref<32x96xf32, #tpu.memory_space<vmem>>, vector<32x96xf32>
    %cst = arith.constant dense<0.000000e+00> : vector<16x96xf32>
    %2 = tpu.matmul %0, %1, %cst {dimension_numbers = #tpu.dot_dimension_numbers<[1], [0], [0], [1], [0, 0, 1, 1], [], []>} : vector<16x32xf32>, vector<32x96xf32>, vector<16x96xf32> -> vector<16x96xf32>
    %c0_3 = arith.constant 0 : index
    %c0_4 = arith.constant 0 : index
    %3 = vector.load %arg3[%c0_3, %c0_4] : memref<16x96xf32, #tpu.memory_space<vmem>>, vector<16x96xf32>
    tpu.vector_store %arg3[%c0_3, %c0_4], %2 {strides = array<i32>} : memref<16x96xf32, #tpu.memory_space<vmem>>, vector<16x96xf32>,
    return
  }
  func.func @transform_0(%arg0: i32) -> (i32, i32) {
    %c0_i32 = arith.constant 0 : i32
    %c0_i32_0 = arith.constant 0 : i32
    return %arg0, %c0_i32 : i32, i32
  }
  func.func @transform_1(%arg0: i32) -> (i32, i32) {
    %c0_i32 = arith.constant 0 : i32
    %c0_i32_0 = arith.constant 0 : i32
    %c0_i32_1 = arith.constant 0 : i32
    return %c0_i32, %c0_i32_0 : i32, i32
  }
  func.func @transform_2(%arg0: i32) -> (i32, i32) {
    %c0_i32 = arith.constant 0 : i32
    %c0_i32_0 = arith.constant 0 : i32
    return %arg0, %c0_i32 : i32, i32
  }
}

module attributes {stable_mosaic.version = 11 : i64} {
  func.func @kernel(%arg0: i32, %arg1: memref<16x32xf32, #tpu.memory_space<vmem>>, %arg2: memref<32x32xf32, #tpu.memory_space<vmem>>, %arg3: memref<1x32xf32, #tpu.memory_space<vmem>>, %arg4: memref<16x32xf32, #tpu.memory_space<vmem>>, %arg5: memref<16x32xf32, #tpu.memory_space<vmem>>) attributes {dimension_semantics = [#tpu.dimension_semantics<parallel>], iteration_bounds = array<i64: 1>, scalar_prefetch = 0 : i64, scratch_operands = 0 : i64, tpu.core_type = #tpu.core_type<tc>, window_params = [{transform_indices = @transform_0, window_bounds = array<i64: 16, 32>}, {pipeline_mode = #tpu.pipeline_mode<synchronous>, transform_indices = @transform_1, window_bounds = array<i64: 32, 32>}, {pipeline_mode = #tpu.pipeline_mode<synchronous>, transform_indices = @transform_2, window_bounds = array<i64: 1, 32>}, {transform_indices = @transform_3, window_bounds = array<i64: 16, 32>}, {transform_indices = @transform_4, window_bounds = array<i64: 16, 32>}]} {
    %c0 = arith.constant 0 : index
    %c0_0 = arith.constant 0 : index
    %0 = vector.load %arg1[%c0, %c0_0] : memref<16x32xf32, #tpu.memory_space<vmem>>, vector<16x32xf32>
    %c0_1 = arith.constant 0 : index
    %c0_2 = arith.constant 0 : index
    %1 = vector.load %arg2[%c0_1, %c0_2] : memref<32x32xf32, #tpu.memory_space<vmem>>, vector<32x32xf32>
    %cst = arith.constant dense<0.000000e+00> : vector<16x32xf32>
    %2 = tpu.matmul %0, %1, %cst {dimension_numbers = #tpu.dot_dimension_numbers<[1], [0], [0], [1], [0, 0, 1, 1], [], []>} : vector<16x32xf32>, vector<32x32xf32>, vector<16x32xf32> -> vector<16x32xf32>
    %c0_3 = arith.constant 0 : index
    %c0_4 = arith.constant 0 : index
    %3 = vector.load %arg3[%c0_3, %c0_4] : memref<1x32xf32, #tpu.memory_space<vmem>>, vector<1x32xf32>
    %4 = vector.broadcast %3 : vector<1x32xf32> to vector<16x32xf32>
    %5 = arith.addf %2, %4 : vector<16x32xf32>
    %c0_5 = arith.constant 0 : index
    %c0_6 = arith.constant 0 : index
    %6 = vector.load %arg4[%c0_5, %c0_6] : memref<16x32xf32, #tpu.memory_space<vmem>>, vector<16x32xf32>
    %7 = arith.addf %5, %6 : vector<16x32xf32>
    %c0_7 = arith.constant 0 : index
    %c0_8 = arith.constant 0 : index
    %8 = vector.load %arg5[%c0_7, %c0_8] : memref<16x32xf32, #tpu.memory_space<vmem>>, vector<16x32xf32>
    tpu.vector_store %arg5[%c0_7, %c0_8], %7 {strides = array<i32>} : memref<16x32xf32, #tpu.memory_space<vmem>>, vector<16x32xf32>,
    return
  }
  func.func @transform_0(%arg0: i32) -> (i32, i32) {
    %c0_i32 = arith.constant 0 : i32
    %c0_i32_0 = arith.constant 0 : i32
    return %arg0, %c0_i32 : i32, i32
  }
  func.func @transform_1(%arg0: i32) -> (i32, i32) {
    %c0_i32 = arith.constant 0 : i32
    %c0_i32_0 = arith.constant 0 : i32
    %c0_i32_1 = arith.constant 0 : i32
    return %c0_i32, %c0_i32_0 : i32, i32
  }
  func.func @transform_2(%arg0: i32) -> (i32, i32) {
    %c0_i32 = arith.constant 0 : i32
    %c0_i32_0 = arith.constant 0 : i32
    %c0_i32_1 = arith.constant 0 : i32
    return %c0_i32, %c0_i32_0 : i32, i32
  }
  func.func @transform_3(%arg0: i32) -> (i32, i32) {
    %c0_i32 = arith.constant 0 : i32
    %c0_i32_0 = arith.constant 0 : i32
    return %arg0, %c0_i32 : i32, i32
  }
  func.func @transform_4(%arg0: i32) -> (i32, i32) {
    %c0_i32 = arith.constant 0 : i32
    %c0_i32_0 = arith.constant 0 : i32
    return %arg0, %c0_i32 : i32, i32
  }
}

module attributes {stable_mosaic.version = 11 : i64} {
  func.func @_layernorm_kernel(%arg0: i32, %arg1: memref<16x32xf32, #tpu.memory_space<vmem>>, %arg2: memref<1x32xf32, #tpu.memory_space<vmem>>, %arg3: memref<1x32xf32, #tpu.memory_space<vmem>>, %arg4: memref<16x32xf32, #tpu.memory_space<vmem>>) attributes {dimension_semantics = [#tpu.dimension_semantics<parallel>], iteration_bounds = array<i64: 1>, scalar_prefetch = 0 : i64, scratch_operands = 0 : i64, tpu.core_type = #tpu.core_type<tc>, window_params = [{transform_indices = @transform_0, window_bounds = array<i64: 16, 32>}, {pipeline_mode = #tpu.pipeline_mode<synchronous>, transform_indices = @transform_1, window_bounds = array<i64: 1, 32>}, {pipeline_mode = #tpu.pipeline_mode<synchronous>, transform_indices = @transform_2, window_bounds = array<i64: 1, 32>}, {transform_indices = @transform_3, window_bounds = array<i64: 16, 32>}]} {
    %c0 = arith.constant 0 : index
    %c0_0 = arith.constant 0 : index
    %0 = vector.load %arg1[%c0, %c0_0] : memref<16x32xf32, #tpu.memory_space<vmem>>, vector<16x32xf32>
    %cst = arith.constant dense<0.000000e+00> : vector<16xf32>
    %1 = vector.multi_reduction <add>, %0, %cst [1] : vector<16x32xf32> to vector<16xf32>
    %2 = vector.shape_cast %1 : vector<16xf32> to vector<16x1xf32>
    %cst_1 = arith.constant 3.200000e+01 : f32
    %3 = vector.broadcast %cst_1 : f32 to vector<16x1xf32>
    %4 = arith.divf %2, %3 : vector<16x1xf32>
    %5 = vector.broadcast %4 : vector<16x1xf32> to vector<16x32xf32>
    %6 = arith.subf %0, %5 : vector<16x32xf32>
    %7 = arith.mulf %6, %6 : vector<16x32xf32>
    %cst_2 = arith.constant dense<0.000000e+00> : vector<16xf32>
    %8 = vector.multi_reduction <add>, %7, %cst_2 [1] : vector<16x32xf32> to vector<16xf32>
    %9 = vector.shape_cast %8 : vector<16xf32> to vector<16x1xf32>
    %cst_3 = arith.constant 3.200000e+01 : f32
    %10 = vector.broadcast %cst_3 : f32 to vector<16x1xf32>
    %11 = arith.divf %9, %10 : vector<16x1xf32>
    %cst_4 = arith.constant 9.99999974E-6 : f32
    %12 = vector.broadcast %cst_4 : f32 to vector<16x1xf32>
    %13 = arith.addf %11, %12 : vector<16x1xf32>
    %14 = math.rsqrt %13 : vector<16x1xf32>
    %15 = vector.broadcast %14 : vector<16x1xf32> to vector<16x32xf32>
    %16 = arith.mulf %6, %15 : vector<16x32xf32>
    %c0_5 = arith.constant 0 : index
    %c0_6 = arith.constant 0 : index
    %17 = vector.load %arg2[%c0_5, %c0_6] : memref<1x32xf32, #tpu.memory_space<vmem>>, vector<1x32xf32>
    %18 = vector.broadcast %17 : vector<1x32xf32> to vector<16x32xf32>
    %19 = arith.mulf %16, %18 : vector<16x32xf32>
    %c0_7 = arith.constant 0 : index
    %c0_8 = arith.constant 0 : index
    %20 = vector.load %arg3[%c0_7, %c0_8] : memref<1x32xf32, #tpu.memory_space<vmem>>, vector<1x32xf32>
    %21 = vector.broadcast %20 : vector<1x32xf32> to vector<16x32xf32>
    %22 = arith.addf %19, %21 : vector<16x32xf32>
    %c0_9 = arith.constant 0 : index
    %c0_10 = arith.constant 0 : index
    %23 = vector.load %arg4[%c0_9, %c0_10] : memref<16x32xf32, #tpu.memory_space<vmem>>, vector<16x32xf32>
    tpu.vector_store %arg4[%c0_9, %c0_10], %22 {strides = array<i32>} : memref<16x32xf32, #tpu.memory_space<vmem>>, vector<16x32xf32>,
    return
  }
  func.func @transform_0(%arg0: i32) -> (i32, i32) {
    %c0_i32 = arith.constant 0 : i32
    %c0_i32_0 = arith.constant 0 : i32
    return %arg0, %c0_i32 : i32, i32
  }
  func.func @transform_1(%arg0: i32) -> (i32, i32) {
    %c0_i32 = arith.constant 0 : i32
    %c0_i32_0 = arith.constant 0 : i32
    %c0_i32_1 = arith.constant 0 : i32
    return %c0_i32, %c0_i32_0 : i32, i32
  }
  func.func @transform_2(%arg0: i32) -> (i32, i32) {
    %c0_i32 = arith.constant 0 : i32
    %c0_i32_0 = arith.constant 0 : i32
    %c0_i32_1 = arith.constant 0 : i32
    return %c0_i32, %c0_i32_0 : i32, i32
  }
  func.func @transform_3(%arg0: i32) -> (i32, i32) {
    %c0_i32 = arith.constant 0 : i32
    %c0_i32_0 = arith.constant 0 : i32
    return %arg0, %c0_i32 : i32, i32
  }
}

module attributes {stable_mosaic.version = 11 : i64} {
  func.func @_attention_kernel(%arg0: i32, %arg1: memref<1x8x8xf32, #tpu.memory_space<vmem>>, %arg2: memref<1x8x8xf32, #tpu.memory_space<vmem>>, %arg3: memref<1x8x8xf32, #tpu.memory_space<vmem>>, %arg4: memref<1x8x8xf32, #tpu.memory_space<vmem>>) attributes {dimension_semantics = [#tpu.dimension_semantics<parallel>], iteration_bounds = array<i64: 8>, scalar_prefetch = 0 : i64, scratch_operands = 0 : i64, tpu.core_type = #tpu.core_type<tc>, window_params = [{transform_indices = @transform_0, window_bounds = array<i64: 1, 8, 8>}, {transform_indices = @transform_1, window_bounds = array<i64: 1, 8, 8>}, {transform_indices = @transform_2, window_bounds = array<i64: 1, 8, 8>}, {transform_indices = @transform_3, window_bounds = array<i64: 1, 8, 8>}]} {
    %c0 = arith.constant 0 : index
    %c0_0 = arith.constant 0 : index
    %c0_1 = arith.constant 0 : index
    %0 = vector.load %arg1[%c0, %c0_0, %c0_1] : memref<1x8x8xf32, #tpu.memory_space<vmem>>, vector<1x8x8xf32>
    %c0_2 = arith.constant 0 : index
    %c0_3 = arith.constant 0 : index
    %c0_4 = arith.constant 0 : index
    %1 = vector.load %arg2[%c0_2, %c0_3, %c0_4] : memref<1x8x8xf32, #tpu.memory_space<vmem>>, vector<1x8x8xf32>
    %c0_5 = arith.constant 0 : index
    %c0_6 = arith.constant 0 : index
    %c0_7 = arith.constant 0 : index
    %2 = vector.load %arg3[%c0_5, %c0_6, %c0_7] : memref<1x8x8xf32, #tpu.memory_space<vmem>>, vector<1x8x8xf32>
    "tpu.trace_start"() <{level = 10 : i32, message = "bqd,bkd->bqk"}> : () -> ()
    %cst = arith.constant dense<0.000000e+00> : vector<1x8x8xf32>
    %3 = tpu.matmul %0, %1, %cst {dimension_numbers = #tpu.dot_dimension_numbers<[2], [2], [1], [1], [0, 0, 0, 1, 1, 1], [0], [0]>} : vector<1x8x8xf32>, vector<1x8x8xf32>, vector<1x8x8xf32> -> vector<1x8x8xf32>
    "tpu.trace_stop"() : () -> ()
    %cst_8 = arith.constant 0.353553385 : f32
    %4 = vector.broadcast %cst_8 : f32 to vector<1x8x8xf32>
    %5 = arith.mulf %3, %4 : vector<1x8x8xf32>
    %cst_9 = arith.constant dense<0xFF800000> : vector<1x8xf32>
    %6 = vector.multi_reduction <maximumf>, %5, %cst_9 [2] : vector<1x8x8xf32> to vector<1x8xf32>
    %7 = vector.shape_cast %6 : vector<1x8xf32> to vector<1x8x1xf32>
    %8 = vector.broadcast %7 : vector<1x8x1xf32> to vector<1x8x8xf32>
    %9 = arith.subf %5, %8 : vector<1x8x8xf32>
    %10 = math.exp %9 : vector<1x8x8xf32>
    %cst_10 = arith.constant dense<0.000000e+00> : vector<1x8xf32>
    %11 = vector.multi_reduction <add>, %10, %cst_10 [2] : vector<1x8x8xf32> to vector<1x8xf32>
    %12 = vector.shape_cast %11 : vector<1x8xf32> to vector<1x8x1xf32>
    "tpu.trace_start"() <{level = 10 : i32, message = "bqk,bkd->bqd"}> : () -> ()
    %cst_11 = arith.constant dense<0.000000e+00> : vector<1x8x8xf32>
    %13 = tpu.matmul %10, %2, %cst_11 {dimension_numbers = #tpu.dot_dimension_numbers<[2], [1], [1], [2], [0, 0, 0, 1, 1, 2], [0], [0]>} : vector<1x8x8xf32>, vector<1x8x8xf32>, vector<1x8x8xf32> -> vector<1x8x8xf32>
    "tpu.trace_stop"() : () -> ()
    %14 = vector.broadcast %12 : vector<1x8x1xf32> to vector<1x8x8xf32>
    %15 = arith.divf %13, %14 : vector<1x8x8xf32>
    %c0_12 = arith.constant 0 : index
    %c0_13 = arith.constant 0 : index
    %c0_14 = arith.constant 0 : index
    %16 = vector.load %arg4[%c0_12, %c0_13, %c0_14] : memref<1x8x8xf32, #tpu.memory_space<vmem>>, vector<1x8x8xf32>
    tpu.vector_store %arg4[%c0_12, %c0_13, %c0_14], %15 {strides = array<i32>} : memref<1x8x8xf32, #tpu.memory_space<vmem>>, vector<1x8x8xf32>,
    return
  }
  func.func @transform_0(%arg0: i32) -> (i32, i32, i32) {
    %c0_i32 = arith.constant 0 : i32
    %c0_i32_0 = arith.constant 0 : i32
    %c0_i32_1 = arith.constant 0 : i32
    return %arg0, %c0_i32, %c0_i32_0 : i32, i32, i32
  }
  func.func @transform_1(%arg0: i32) -> (i32, i32, i32) {
    %c0_i32 = arith.constant 0 : i32
    %c0_i32_0 = arith.constant 0 : i32
    %c0_i32_1 = arith.constant 0 : i32
    return %arg0, %c0_i32, %c0_i32_0 : i32, i32, i32
  }
  func.func @transform_2(%arg0: i32) -> (i32, i32, i32) {
    %c0_i32 = arith.constant 0 : i32
    %c0_i32_0 = arith.constant 0 : i32
    %c0_i32_1 = arith.constant 0 : i32
    return %arg0, %c0_i32, %c0_i32_0 : i32, i32, i32
  }
  func.func @transform_3(%arg0: i32) -> (i32, i32, i32) {
    %c0_i32 = arith.constant 0 : i32
    %c0_i32_0 = arith.constant 0 : i32
    %c0_i32_1 = arith.constant 0 : i32
    return %arg0, %c0_i32, %c0_i32_0 : i32, i32, i32
  }
}

module attributes {stable_mosaic.version = 11 : i64} {
  func.func @kernel(%arg0: i32, %arg1: memref<16x32xf32, #tpu.memory_space<vmem>>, %arg2: memref<32x64xf32, #tpu.memory_space<vmem>>, %arg3: memref<1x64xf32, #tpu.memory_space<vmem>>, %arg4: memref<16x64xf32, #tpu.memory_space<vmem>>) attributes {dimension_semantics = [#tpu.dimension_semantics<parallel>], iteration_bounds = array<i64: 1>, scalar_prefetch = 0 : i64, scratch_operands = 0 : i64, tpu.core_type = #tpu.core_type<tc>, window_params = [{transform_indices = @transform_0, window_bounds = array<i64: 16, 32>}, {pipeline_mode = #tpu.pipeline_mode<synchronous>, transform_indices = @transform_1, window_bounds = array<i64: 32, 64>}, {pipeline_mode = #tpu.pipeline_mode<synchronous>, transform_indices = @transform_2, window_bounds = array<i64: 1, 64>}, {transform_indices = @transform_3, window_bounds = array<i64: 16, 64>}]} {
    %c0 = arith.constant 0 : index
    %c0_0 = arith.constant 0 : index
    %0 = vector.load %arg1[%c0, %c0_0] : memref<16x32xf32, #tpu.memory_space<vmem>>, vector<16x32xf32>
    %c0_1 = arith.constant 0 : index
    %c0_2 = arith.constant 0 : index
    %1 = vector.load %arg2[%c0_1, %c0_2] : memref<32x64xf32, #tpu.memory_space<vmem>>, vector<32x64xf32>
    %cst = arith.constant dense<0.000000e+00> : vector<16x64xf32>
    %2 = tpu.matmul %0, %1, %cst {dimension_numbers = #tpu.dot_dimension_numbers<[1], [0], [0], [1], [0, 0, 1, 1], [], []>} : vector<16x32xf32>, vector<32x64xf32>, vector<16x64xf32> -> vector<16x64xf32>
    %c0_3 = arith.constant 0 : index
    %c0_4 = arith.constant 0 : index
    %3 = vector.load %arg3[%c0_3, %c0_4] : memref<1x64xf32, #tpu.memory_space<vmem>>, vector<1x64xf32>
    %4 = vector.broadcast %3 : vector<1x64xf32> to vector<16x64xf32>
    %5 = arith.addf %2, %4 : vector<16x64xf32>
    %cst_5 = arith.constant 5.000000e-01 : f32
    %6 = vector.broadcast %cst_5 : f32 to vector<16x64xf32>
    %7 = arith.mulf %6, %5 : vector<16x64xf32>
    %cst_6 = arith.constant 4.471500e-02 : f32
    %8 = vector.broadcast %cst_6 : f32 to vector<16x64xf32>
    %9 = arith.mulf %8, %5 : vector<16x64xf32>
    %10 = arith.mulf %9, %5 : vector<16x64xf32>
    %11 = arith.mulf %10, %5 : vector<16x64xf32>
    %12 = arith.addf %5, %11 : vector<16x64xf32>
    %cst_7 = arith.constant 0.797884583 : f32
    %13 = vector.broadcast %cst_7 : f32 to vector<16x64xf32>
    %14 = arith.mulf %13, %12 : vector<16x64xf32>
    %15 = math.tanh %14 : vector<16x64xf32>
    %cst_8 = arith.constant 1.000000e+00 : f32
    %16 = vector.broadcast %cst_8 : f32 to vector<16x64xf32>
    %17 = arith.addf %16, %15 : vector<16x64xf32>
    %18 = arith.mulf %7, %17 : vector<16x64xf32>
    %c0_9 = arith.constant 0 : index
    %c0_10 = arith.constant 0 : index
    %19 = vector.load %arg4[%c0_9, %c0_10] : memref<16x64xf32, #tpu.memory_space<vmem>>, vector<16x64xf32>
    tpu.vector_store %arg4[%c0_9, %c0_10], %18 {strides = array<i32>} : memref<16x64xf32, #tpu.memory_space<vmem>>, vector<16x64xf32>,
    return
  }
  func.func @transform_0(%arg0: i32) -> (i32, i32) {
    %c0_i32 = arith.constant 0 : i32
    %c0_i32_0 = arith.constant 0 : i32
    return %arg0, %c0_i32 : i32, i32
  }
  func.func @transform_1(%arg0: i32) -> (i32, i32) {
    %c0_i32 = arith.constant 0 : i32
    %c0_i32_0 = arith.constant 0 : i32
    %c0_i32_1 = arith.constant 0 : i32
    return %c0_i32, %c0_i32_0 : i32, i32
  }
  func.func @transform_2(%arg0: i32) -> (i32, i32) {
    %c0_i32 = arith.constant 0 : i32
    %c0_i32_0 = arith.constant 0 : i32
    %c0_i32_1 = arith.constant 0 : i32
    return %c0_i32, %c0_i32_0 : i32, i32
  }
  func.func @transform_3(%arg0: i32) -> (i32, i32) {
    %c0_i32 = arith.constant 0 : i32
    %c0_i32_0 = arith.constant 0 : i32
    return %arg0, %c0_i32 : i32, i32
  }
}

module attributes {stable_mosaic.version = 11 : i64} {
  func.func @kernel(%arg0: i32, %arg1: memref<16x64xf32, #tpu.memory_space<vmem>>, %arg2: memref<64x32xf32, #tpu.memory_space<vmem>>, %arg3: memref<1x32xf32, #tpu.memory_space<vmem>>, %arg4: memref<16x32xf32, #tpu.memory_space<vmem>>, %arg5: memref<16x32xf32, #tpu.memory_space<vmem>>) attributes {dimension_semantics = [#tpu.dimension_semantics<parallel>], iteration_bounds = array<i64: 1>, scalar_prefetch = 0 : i64, scratch_operands = 0 : i64, tpu.core_type = #tpu.core_type<tc>, window_params = [{transform_indices = @transform_0, window_bounds = array<i64: 16, 64>}, {pipeline_mode = #tpu.pipeline_mode<synchronous>, transform_indices = @transform_1, window_bounds = array<i64: 64, 32>}, {pipeline_mode = #tpu.pipeline_mode<synchronous>, transform_indices = @transform_2, window_bounds = array<i64: 1, 32>}, {transform_indices = @transform_3, window_bounds = array<i64: 16, 32>}, {transform_indices = @transform_4, window_bounds = array<i64: 16, 32>}]} {
    %c0 = arith.constant 0 : index
    %c0_0 = arith.constant 0 : index
    %0 = vector.load %arg1[%c0, %c0_0] : memref<16x64xf32, #tpu.memory_space<vmem>>, vector<16x64xf32>
    %c0_1 = arith.constant 0 : index
    %c0_2 = arith.constant 0 : index
    %1 = vector.load %arg2[%c0_1, %c0_2] : memref<64x32xf32, #tpu.memory_space<vmem>>, vector<64x32xf32>
    %cst = arith.constant dense<0.000000e+00> : vector<16x32xf32>
    %2 = tpu.matmul %0, %1, %cst {dimension_numbers = #tpu.dot_dimension_numbers<[1], [0], [0], [1], [0, 0, 1, 1], [], []>} : vector<16x64xf32>, vector<64x32xf32>, vector<16x32xf32> -> vector<16x32xf32>
    %c0_3 = arith.constant 0 : index
    %c0_4 = arith.constant 0 : index
    %3 = vector.load %arg3[%c0_3, %c0_4] : memref<1x32xf32, #tpu.memory_space<vmem>>, vector<1x32xf32>
    %4 = vector.broadcast %3 : vector<1x32xf32> to vector<16x32xf32>
    %5 = arith.addf %2, %4 : vector<16x32xf32>
    %c0_5 = arith.constant 0 : index
    %c0_6 = arith.constant 0 : index
    %6 = vector.load %arg4[%c0_5, %c0_6] : memref<16x32xf32, #tpu.memory_space<vmem>>, vector<16x32xf32>
    %7 = arith.addf %5, %6 : vector<16x32xf32>
    %c0_7 = arith.constant 0 : index
    %c0_8 = arith.constant 0 : index
    %8 = vector.load %arg5[%c0_7, %c0_8] : memref<16x32xf32, #tpu.memory_space<vmem>>, vector<16x32xf32>
    tpu.vector_store %arg5[%c0_7, %c0_8], %7 {strides = array<i32>} : memref<16x32xf32, #tpu.memory_space<vmem>>, vector<16x32xf32>,
    return
  }
  func.func @transform_0(%arg0: i32) -> (i32, i32) {
    %c0_i32 = arith.constant 0 : i32
    %c0_i32_0 = arith.constant 0 : i32
    return %arg0, %c0_i32 : i32, i32
  }
  func.func @transform_1(%arg0: i32) -> (i32, i32) {
    %c0_i32 = arith.constant 0 : i32
    %c0_i32_0 = arith.constant 0 : i32
    %c0_i32_1 = arith.constant 0 : i32
    return %c0_i32, %c0_i32_0 : i32, i32
  }
  func.func @transform_2(%arg0: i32) -> (i32, i32) {
    %c0_i32 = arith.constant 0 : i32
    %c0_i32_0 = arith.constant 0 : i32
    %c0_i32_1 = arith.constant 0 : i32
    return %c0_i32, %c0_i32_0 : i32, i32
  }
  func.func @transform_3(%arg0: i32) -> (i32, i32) {
    %c0_i32 = arith.constant 0 : i32
    %c0_i32_0 = arith.constant 0 : i32
    return %arg0, %c0_i32 : i32, i32
  }
  func.func @transform_4(%arg0: i32) -> (i32, i32) {
    %c0_i32 = arith.constant 0 : i32
    %c0_i32_0 = arith.constant 0 : i32
    return %arg0, %c0_i32 : i32, i32
  }
}

module attributes {stable_mosaic.version = 11 : i64} {
  func.func @kernel(%arg0: i32, %arg1: memref<16x32xf32, #tpu.memory_space<vmem>>, %arg2: memref<32x32xf32, #tpu.memory_space<vmem>>, %arg3: memref<16x32xf32, #tpu.memory_space<vmem>>) attributes {dimension_semantics = [#tpu.dimension_semantics<parallel>], iteration_bounds = array<i64: 1>, scalar_prefetch = 0 : i64, scratch_operands = 0 : i64, tpu.core_type = #tpu.core_type<tc>, window_params = [{transform_indices = @transform_0, window_bounds = array<i64: 16, 32>}, {pipeline_mode = #tpu.pipeline_mode<synchronous>, transform_indices = @transform_1, window_bounds = array<i64: 32, 32>}, {transform_indices = @transform_2, window_bounds = array<i64: 16, 32>}]} {
    %c0 = arith.constant 0 : index
    %c0_0 = arith.constant 0 : index
    %0 = vector.load %arg1[%c0, %c0_0] : memref<16x32xf32, #tpu.memory_space<vmem>>, vector<16x32xf32>
    %c0_1 = arith.constant 0 : index
    %c0_2 = arith.constant 0 : index
    %1 = vector.load %arg2[%c0_1, %c0_2] : memref<32x32xf32, #tpu.memory_space<vmem>>, vector<32x32xf32>
    %cst = arith.constant dense<0.000000e+00> : vector<16x32xf32>
    %2 = tpu.matmul %0, %1, %cst {dimension_numbers = #tpu.dot_dimension_numbers<[1], [0], [0], [1], [0, 0, 1, 1], [], []>} : vector<16x32xf32>, vector<32x32xf32>, vector<16x32xf32> -> vector<16x32xf32>
    %c0_3 = arith.constant 0 : index
    %c0_4 = arith.constant 0 : index
    %3 = vector.load %arg3[%c0_3, %c0_4] : memref<16x32xf32, #tpu.memory_space<vmem>>, vector<16x32xf32>
    tpu.vector_store %arg3[%c0_3, %c0_4], %2 {strides = array<i32>} : memref<16x32xf32, #tpu.memory_space<vmem>>, vector<16x32xf32>,
    return
  }
  func.func @transform_0(%arg0: i32) -> (i32, i32) {
    %c0_i32 = arith.constant 0 : i32
    %c0_i32_0 = arith.constant 0 : i32
    return %arg0, %c0_i32 : i32, i32
  }
  func.func @transform_1(%arg0: i32) -> (i32, i32) {
    %c0_i32 = arith.constant 0 : i32
    %c0_i32_0 = arith.constant 0 : i32
    %c0_i32_1 = arith.constant 0 : i32
    return %c0_i32, %c0_i32_0 : i32, i32
  }
  func.func @transform_2(%arg0: i32) -> (i32, i32) {
    %c0_i32 = arith.constant 0 : i32
    %c0_i32_0 = arith.constant 0 : i32
    return %arg0, %c0_i32 : i32, i32
  }
}

module attributes {stable_mosaic.version = 11 : i64} {
  func.func @kernel(%arg0: i32, %arg1: memref<16x64xf32, #tpu.memory_space<vmem>>, %arg2: memref<64x32xf32, #tpu.memory_space<vmem>>, %arg3: memref<1x32xf32, #tpu.memory_space<vmem>>, %arg4: memref<16x32xf32, #tpu.memory_space<vmem>>, %arg5: memref<16x32xf32, #tpu.memory_space<vmem>>) attributes {dimension_semantics = [#tpu.dimension_semantics<parallel>], iteration_bounds = array<i64: 1>, scalar_prefetch = 0 : i64, scratch_operands = 0 : i64, tpu.core_type = #tpu.core_type<tc>, window_params = [{transform_indices = @transform_0, window_bounds = array<i64: 16, 64>}, {pipeline_mode = #tpu.pipeline_mode<synchronous>, transform_indices = @transform_1, window_bounds = array<i64: 64, 32>}, {pipeline_mode = #tpu.pipeline_mode<synchronous>, transform_indices = @transform_2, window_bounds = array<i64: 1, 32>}, {transform_indices = @transform_3, window_bounds = array<i64: 16, 32>}, {transform_indices = @transform_4, window_bounds = array<i64: 16, 32>}]} {
    %c0 = arith.constant 0 : index
    %c0_0 = arith.constant 0 : index
    %0 = vector.load %arg1[%c0, %c0_0] : memref<16x64xf32, #tpu.memory_space<vmem>>, vector<16x64xf32>
    %c0_1 = arith.constant 0 : index
    %c0_2 = arith.constant 0 : index
    %1 = vector.load %arg2[%c0_1, %c0_2] : memref<64x32xf32, #tpu.memory_space<vmem>>, vector<64x32xf32>
    %cst = arith.constant dense<0.000000e+00> : vector<16x32xf32>
    %2 = tpu.matmul %0, %1, %cst {dimension_numbers = #tpu.dot_dimension_numbers<[1], [0], [0], [1], [0, 0, 1, 1], [], []>} : vector<16x64xf32>, vector<64x32xf32>, vector<16x32xf32> -> vector<16x32xf32>
    %c0_3 = arith.constant 0 : index
    %c0_4 = arith.constant 0 : index
    %3 = vector.load %arg3[%c0_3, %c0_4] : memref<1x32xf32, #tpu.memory_space<vmem>>, vector<1x32xf32>
    %4 = vector.broadcast %3 : vector<1x32xf32> to vector<16x32xf32>
    %5 = arith.addf %2, %4 : vector<16x32xf32>
    %c0_5 = arith.constant 0 : index
    %c0_6 = arith.constant 0 : index
    %6 = vector.load %arg4[%c0_5, %c0_6] : memref<16x32xf32, #tpu.memory_space<vmem>>, vector<16x32xf32>
    %7 = arith.addf %5, %6 : vector<16x32xf32>
    %c0_7 = arith.constant 0 : index
    %c0_8 = arith.constant 0 : index
    %8 = vector.load %arg5[%c0_7, %c0_8] : memref<16x32xf32, #tpu.memory_space<vmem>>, vector<16x32xf32>
    tpu.vector_store %arg5[%c0_7, %c0_8], %7 {strides = array<i32>} : memref<16x32xf32, #tpu.memory_space<vmem>>, vector<16x32xf32>,
    return
  }
  func.func @transform_0(%arg0: i32) -> (i32, i32) {
    %c0_i32 = arith.constant 0 : i32
    %c0_i32_0 = arith.constant 0 : i32
    return %arg0, %c0_i32 : i32, i32
  }
  func.func @transform_1(%arg0: i32) -> (i32, i32) {
    %c0_i32 = arith.constant 0 : i32
    %c0_i32_0 = arith.constant 0 : i32
    %c0_i32_1 = arith.constant 0 : i32
    return %c0_i32, %c0_i32_0 : i32, i32
  }
  func.func @transform_2(%arg0: i32) -> (i32, i32) {
    %c0_i32 = arith.constant 0 : i32
    %c0_i32_0 = arith.constant 0 : i32
    %c0_i32_1 = arith.constant 0 : i32
    return %c0_i32, %c0_i32_0 : i32, i32
  }
  func.func @transform_3(%arg0: i32) -> (i32, i32) {
    %c0_i32 = arith.constant 0 : i32
    %c0_i32_0 = arith.constant 0 : i32
    return %arg0, %c0_i32 : i32, i32
  }
  func.func @transform_4(%arg0: i32) -> (i32, i32) {
    %c0_i32 = arith.constant 0 : i32
    %c0_i32_0 = arith.constant 0 : i32
    return %arg0, %c0_i32 : i32, i32
  }
}

</mosaic_0001>

<bundles_post_ra>
// kernel: cross_transformer_forward.31
= control target key start
LH: loop header
LB: loop body
LE: loop exit
PB: predicated region body
PF: predicated region fallthrough
CT: control target
= control target key end

     0   :  { %7 = vsyncpa [#allocation3], 0  ;;  %s312_s9 = smov 0   ;;  %s332_s0 = inlined_call_operand.vmem [shape: f32[2,8,32], index: 0, kind: input, shape index: {}]   ;;  %s333_s1 = inlined_call_operand.hbm [shape: f32[1,8,32], index: 1, kind: input, shape index: {}]   ;;  %s334_s2 = inlined_call_operand.vmem [shape: f32[2,8,32], index: 2, kind: output, shape index: {}]  }
   0x1 LB: > { %s224_s10 = sadd.s32 4294967295, %s294_s9   ;;  %p226_p0 = scmp.ge.s32.totalorder %s294_s9, 1  ;;  %s294_s9 = sphi %s312_s9, %s13_s9  }
   0x2   : > { %p91_p1 = scmp.lt.s32.totalorder %s294_s9, 3  ;;  %s103_s13 = sshll.u32 %s333_s1, 4  ;;  %s104_s13 = int_to_ptr.hbm [resolvable:$true] %s103_s13 }
   0x3   : > { %p243_p3 = scmp.eq.s32.totalorder %s224_s10, 0  ;;  %s296_s14 = smov [#allocation2]  }
   0x4   : > { %p92_p2 = pnand %p226_p0, %p91_p1  ;;  %s105_s15 = sshll.u32 %s296_s14, 4  ;;  %s106_s15 = int_to_ptr.vmem [resolvable:$true] %s105_s15 }
   0x6   : > { %p239_p4 = pneg %p92_p2  ;;  %125 = sbr.rel (%p92_p2) target bundleno = 21 (0x15), region = 28 }
   0x8   : > { %p240_p5 = pnand %p243_p3, %p239_p4 }
   0xa   : > { %242 = dma.hbm_to_vmem [thread:$0]  (!%p240_p5), %s104_s13, 128, %s106_s15, [#allocation3]  }
   0xb   : > { %289 = dma.done.wait (%p243_p3), [#allocation3], 128  }
   0xc   : > { %291 = vsyncadd (%p243_p3), [#allocation3], 4294967168  ;;  %p146_p6 = scmp.lt.s32.totalorder %s224_s10, 1  ;;  %v155_v1 = vld [vmem:[#allocation2] sm:$0xff]  ;;  %vm157_vm0 = vcmask 261120  }
   0xe   : > { %s336_s10 = smov (!%p146_p6, %s224_s10), 1 }
   0xf   : > { %s231_s16 = sshll.u32 %s336_s10, 3 }
  0x10   : > { %s149_s19 = scalar_lea.vmem %s332_s0, %s231_s16  ;;  %s153_s22 = scalar_lea.vmem %s334_s2, %s231_s16 }
  0x11   : > { %v154_v0 = vld [vmem:[%s149_s19] sm:$0xff] }
  0x12   : > { %v156_v2 = vadd.f32 %v155_v1, %v154_v0 }
  0x14   : > { %158 = vst.msk [vmem:[%s153_s22] sm:$0xff] %vm157_vm0, %v156_v2 }
  0x15 PF: > { %s13_s9 = sadd.s32 1, %s294_s9  }
  0x16   : > { %p10_p7 = scmp.ge.s32.totalorder %s13_s9, 4  }
  0x18   :  { %12 = sbr.rel (!%p10_p7) target bundleno = 1 (0x1), region = 63 }
  0x1d   :  { %178 = vsyncpa [#allocation3], 1 }
  0x1e   :  { %180 = vsyncpa [#allocation3 + $0x1], 1 }

// kernel: cross_transformer_forward.33
= control target key start
LH: loop header
LB: loop body
LE: loop exit
PB: predicated region body
PF: predicated region fallthrough
CT: control target
= control target key end

     0   :  { %vm17_vm0 = vcmask 261120   ;;  %vm47_vm1 = vcmask 785408   ;;  %s99_s1 = inlined_call_operand.vmem [shape: f32[32,96], index: 1, kind: input, shape index: {}]   ;;  %s100_s0 = inlined_call_operand.vmem [shape: f32[16,32], index: 0, kind: input, shape index: {}]   ;;  %s101_s2 = inlined_call_operand.vmem [shape: f32[16,96], index: 2, kind: output, shape index: {}]  }
   0x1   :  { %v16_v0 = vld [vmem:[%s99_s1 + $0x18] sm:$0xff]  ;;  %v15_v1 = vld [vmem:[%s99_s1 + $0x10] sm:$0xff]  ;;  %v14_v2 = vld [vmem:[%s99_s1 + $0x8] sm:$0xff] }
   0x2   :  { %36 = vmatpush.msra.mxu0 %v16_v0  ;;  %56 = vmatpush.msra.mxu1 %v16_v0  ;;  %v13_v3 = vld [vmem:[%s99_s1] sm:$0xff]  ;;  %v12_v5 = vld [vmem:[%s100_s0 + $0x8] sm:$0xff] }
   0x3   :  { %v11_v4 = vld [vmem:[%s100_s0] sm:$0xff] }
   0x4   :  { %37 = vmatpush.msra.mxu0 %v15_v1  ;;  %57 = vmatpush.msra.mxu1 %v15_v1 }
   0x6   :  { %38 = vmatpush.msra.mxu0 %v14_v2  ;;  %58 = vmatpush.msra.mxu1 %v14_v2 }
   0x8   :  { %39 = vmatpush.msra.mxu0 %v13_v3  ;;  %59 = vmatpush.msra.mxu1 %v13_v3 }
   0x9   :  { %54 = vmatmul.msk.f32.vlgmr.msra.gmra.mxu0 %vm17_vm0, %v11_v4  ;;  %55 = vmatmul.msk.f32.vlgmr.msra.gmra.mxu1 %vm17_vm0, %v12_v5 }
  0x86   :  { %v41_v6 = vpop.f32.mrf.mxu0  ;;  %v44_v7 = vpop.f32.mrf.mxu1 }
  0x87   :  { %48 = vst.msk [vmem:[%s101_s2] sm:$0xff] %vm47_vm1, %v41_v6 }
  0x88   :  { %49 = vst.msk [vmem:[%s101_s2 + $0x8] sm:$0xff] %vm47_vm1, %v44_v7 }

// kernel: cross_transformer_forward.32
= control target key start
LH: loop header
LB: loop body
LE: loop exit
PB: predicated region body
PF: predicated region fallthrough
CT: control target
= control target key end

     0   :  { %8 = vsyncpa [#allocation3], 0  ;;  %s226_s0 = inlined_call_operand.vmem [shape: f32[16,32], index: 0, kind: input, shape index: {}]   ;;  %s227_s1 = inlined_call_operand.hbm [shape: f32[1,32], index: 1, kind: input, shape index: {}]   ;;  %s228_s2 = inlined_call_operand.hbm [shape: f32[1,32], index: 2, kind: input, shape index: {}]   ;;  %s229_s3 = inlined_call_operand.vmem [shape: f32[16,32], index: 3, kind: output, shape index: {}]  }
   0x1   :  { %s17_s14 = sshll.u32 %s227_s1, 4  ;;  %s18_s14 = int_to_ptr.hbm [resolvable:$true] %s17_s14 }
   0x2   :  { %9 = vsyncpa [#allocation5], 0  ;;  %s179_s15 = smov [#allocation2]   ;;  %s28_s19 = sshll.u32 %s228_s2, 4  ;;  %s29_s19 = int_to_ptr.hbm [resolvable:$true] %s28_s19 }
   0x3   :  { %s19_s16 = sshll.u32 %s179_s15, 4  ;;  %s180_s20 = smov [#allocation4]   ;;  %s20_s16 = int_to_ptr.vmem [resolvable:$true] %s19_s16 }
   0x4   :  { %22 = dma.hbm_to_vmem [thread:$0]  %s18_s14, 16, %s20_s16, [#allocation3]  }
   0x5   :  { %s30_s21 = sshll.u32 %s180_s20, 4  ;;  %s31_s21 = int_to_ptr.vmem [resolvable:$true] %s30_s21 }
   0x6   :  { %33 = dma.hbm_to_vmem [thread:$0]  %s29_s19, 16, %s31_s21, [#allocation5]  }
   0x7   :  { %175 = dma.done.wait [#allocation3], 16  }
   0x8   :  { %176 = vsyncadd [#allocation3], 4294967280 }
   0x9   :  { %177 = dma.done.wait [#allocation5], 16  }
   0xa   :  { %178 = vsyncadd [#allocation5], 4294967280  ;;  %vm44_vm0 = vcmask 261120   ;;  %v42_v0 = vld [vmem:[%s226_s0] sm:$0xff]  ;;  %v43_v2 = vld [vmem:[%s226_s0 + $0x8] sm:$0xff]  ;;  %v181_v4 = vmov 32.0  }
   0xb   :  { %v45_v1 = vsel %vm44_vm0, %v42_v0, 0.0  ;;  %v48_v3 = vsel %vm44_vm0, %v43_v2, 0.0  ;;  %121 = vrcp.f32 %v181_v4  ;;  %v119_v35 = vld [vmem:[#allocation2] ss:$0 sm:$0xff]  ;;  %v120_v38 = vld [vmem:[#allocation4] ss:$0 sm:$0xff] }
   0xc   :  { %46 = vadd.xlane.f32.xlu0 %v45_v1 }
  0x11   :  { %v122_v5 = vpop.eup %121 }
  0x12   :  { %v52_v6 = vmul.f32 32.0, %v122_v5  ;;  %vm56_vm1 = vweird.f32 %v122_v5 }
  0x14   :  { %49 = vadd.xlane.f32.xlu0 %v48_v3  ;;  %v53_v7 = vsub.f32 1.0, %v52_v6 }
  0x16   :  { %v54_v8 = vmul.f32 %v122_v5, %v53_v7 }
  0x18   :  { %v55_v9 = vadd.f32 %v122_v5, %v54_v8 }
  0x1a   :  { %v57_v10 = vsel %vm56_vm1, %v122_v5, %v55_v9 }
  0x7f   :  { %v47_v11 = vpop.xlane.xlu0 %46 }
  0x80   :  { %v58_v12 = vmul.f32 %v57_v10, %v47_v11 }
  0x82   :  { %v60_v13 = vsub.f32 %v42_v0, %v58_v12 }
  0x84   :  { %v62_v14 = vmul.f32 %v60_v13, %v60_v13 }
  0x86   :  { %v64_v15 = vsel %vm44_vm0, %v62_v14, 0.0 }
  0x87   :  { %65 = vadd.xlane.f32.xlu1 %v64_v15  ;;  %v50_v16 = vpop.xlane.xlu0 %49 }
  0x88   :  { %v59_v17 = vmul.f32 %v57_v10, %v50_v16 }
  0x8a   :  { %v61_v18 = vsub.f32 %v43_v2, %v59_v17 }
  0x8c   :  { %v63_v19 = vmul.f32 %v61_v18, %v61_v18 }
  0x8e   :  { %v67_v20 = vsel %vm44_vm0, %v63_v19, 0.0 }
  0x8f   :  { %68 = vadd.xlane.f32.xlu1 %v67_v20 }
  0xfa   :  { %v66_v21 = vpop.xlane.xlu1 %65 }
  0xfb   :  { %v70_v22 = vmul.f32 %v66_v21, %v57_v10 }
  0xfd   :  { %v72_v23 = vadd.f32 1e-05, %v70_v22 }
  0xff   :  { %123 = vrsqrt.f32 %v72_v23  ;;  %vm80_vm3 = vweird.f32 %v72_v23 }
 0x102   :  { %v69_v24 = vpop.xlane.xlu1 %68 }
 0x103   :  { %v71_v25 = vmul.f32 %v69_v24, %v57_v10 }
 0x105   :  { %v124_v26 = vpop.eup %123  ;;  %v73_v27 = vadd.f32 1e-05, %v71_v25 }
 0x106   :  { %v75_v28 = vmul.f32 %v124_v26, %v72_v23  ;;  %vm81_vm2 = vweird.f32 %v124_v26 }
 0x107   :  { %125 = vrsqrt.f32 %v73_v27  ;;  %vm82_vm4 = vmor %vm80_vm3, %vm81_vm2  ;;  %vm90_vm6 = vweird.f32 %v73_v27 }
 0x108   :  { %v76_v29 = vmul.f32 %v124_v26, %v75_v28 }
 0x10a   :  { %v77_v30 = vmul.f32 0.5, %v76_v29 }
 0x10c   :  { %v78_v31 = vsub.f32 1.5, %v77_v30 }
 0x10d   :  { %v126_v32 = vpop.eup %125 }
 0x10e   :  { %v79_v33 = vmul.f32 %v124_v26, %v78_v31  ;;  %v85_v34 = vmul.f32 %v126_v32, %v73_v27  ;;  %vm91_vm5 = vweird.f32 %v126_v32 }
 0x10f   :  { %vm92_vm7 = vmor %vm90_vm6, %vm91_vm5 }
 0x110   :  { %v83_v36 = vsel %vm82_vm4, %v124_v26, %v79_v33  ;;  %v86_v37 = vmul.f32 %v126_v32, %v85_v34 }
 0x111   :  { %v94_v39 = vmul.f32 %v83_v36, %v60_v13 }
 0x112   :  { %v87_v40 = vmul.f32 0.5, %v86_v37 }
 0x113   :  { %v100_v41 = vmul.f32 %v119_v35, %v94_v39 }
 0x114   :  { %v88_v42 = vsub.f32 1.5, %v87_v40 }
 0x115   :  { %v106_v43 = vadd.f32 %v120_v38, %v100_v41 }
 0x116   :  { %v89_v44 = vmul.f32 %v126_v32, %v88_v42 }
 0x117   :  { %108 = vst.msk [vmem:[%s229_s3] sm:$0xff] %vm44_vm0, %v106_v43 }
 0x118   :  { %v93_v45 = vsel %vm92_vm7, %v126_v32, %v89_v44 }
 0x119   :  { %v95_v46 = vmul.f32 %v93_v45, %v61_v18 }
 0x11b   :  { %v101_v47 = vmul.f32 %v119_v35, %v95_v46 }
 0x11d   :  { %v107_v48 = vadd.f32 %v120_v38, %v101_v47 }
 0x11f   :  { %109 = vst.msk [vmem:[%s229_s3 + $0x8] sm:$0xff] %vm44_vm0, %v107_v48 }
 0x120   :  { %114 = vsyncpa [#allocation3], 1 }
 0x121   :  { %115 = vsyncpa [#allocation5], 1 }

// kernel: cross_transformer_forward.35
= control target key start
LH: loop header
LB: loop body
LE: loop exit
PB: predicated region body
PF: predicated region fallthrough
CT: control target
= control target key end

     0   :  { %vm27_vm0 = vcmask 261120   ;;  %s136_s1 = inlined_call_operand.vmem [shape: f32[32,32], index: 1, kind: input, shape index: {}]   ;;  %s137_s2 = inlined_call_operand.vmem [shape: f32[1,32], index: 2, kind: input, shape index: {}]   ;;  %s138_s0 = inlined_call_operand.vmem [shape: f32[16,32], index: 0, kind: input, shape index: {}]   ;;  %s139_s3 = inlined_call_operand.vmem [shape: f32[16,32], index: 3, kind: input, shape index: {}]   ;;  %s140_s4 = inlined_call_operand.vmem [shape: f32[16,32], index: 4, kind: output, shape index: {}]  }
   0x1   :  { %v22_v0 = vld [vmem:[%s136_s1 + $0x18] sm:$0xff]  ;;  %v21_v1 = vld [vmem:[%s136_s1 + $0x10] sm:$0xff]  ;;  %v20_v2 = vld [vmem:[%s136_s1 + $0x8] sm:$0xff] }
   0x2   :  { %46 = vmatpush.msra.mxu0 %v22_v0  ;;  %69 = vmatpush.msra.mxu1 %v22_v0  ;;  %v19_v3 = vld [vmem:[%s136_s1] sm:$0xff]  ;;  %v18_v5 = vld [vmem:[%s138_s0 + $0x8] sm:$0xff] }
   0x3   :  { %v17_v4 = vld [vmem:[%s138_s0] sm:$0xff]  ;;  %v58_v10 = vld [vmem:[%s139_s3 + $0x8] sm:$0xff] }
   0x4   :  { %47 = vmatpush.msra.mxu0 %v21_v1  ;;  %70 = vmatpush.msra.mxu1 %v21_v1  ;;  %v73_v6 = vld [vmem:[%s137_s2] ss:$0 sm:$0xff] }
   0x5   :  { %v57_v8 = vld [vmem:[%s139_s3] sm:$0xff] }
   0x6   :  { %48 = vmatpush.msra.mxu0 %v20_v2  ;;  %71 = vmatpush.msra.mxu1 %v20_v2 }
   0x8   :  { %49 = vmatpush.msra.mxu0 %v19_v3  ;;  %72 = vmatpush.msra.mxu1 %v19_v3 }
   0x9   :  { %67 = vmatmul.msk.f32.vlgmr.msra.gmra.mxu0 %vm27_vm0, %v17_v4  ;;  %68 = vmatmul.msk.f32.vlgmr.msra.gmra.mxu1 %vm27_vm0, %v18_v5 }
  0x86   :  { %v51_v7 = vpop.f32.mrf.mxu0  ;;  %v54_v9 = vpop.f32.mrf.mxu1 }
  0x87   :  { %v52_v11 = vadd.f32 %v73_v6, %v51_v7  ;;  %v55_v12 = vadd.f32 %v73_v6, %v54_v9 }
  0x89   :  { %v59_v13 = vadd.f32 %v57_v8, %v52_v11  ;;  %v60_v14 = vadd.f32 %v58_v10, %v55_v12 }
  0x8b   :  { %61 = vst.msk [vmem:[%s140_s4] sm:$0xff] %vm27_vm0, %v59_v13 }
  0x8c   :  { %62 = vst.msk [vmem:[%s140_s4 + $0x8] sm:$0xff] %vm27_vm0, %v60_v14 }

// kernel: cross_transformer_forward.36
= control target key start
LH: loop header
LB: loop body
LE: loop exit
PB: predicated region body
PF: predicated region fallthrough
CT: control target
= control target key end

     0   :  { %vm16_vm0 = vcmask 261120   ;;  %v95_v4 = vmov 32.0   ;;  %s140_s0 = inlined_call_operand.vmem [shape: f32[16,32], index: 0, kind: input, shape index: {}]   ;;  %s141_s1 = inlined_call_operand.vmem [shape: f32[1,32], index: 1, kind: input, shape index: {}]   ;;  %s142_s2 = inlined_call_operand.vmem [shape: f32[1,32], index: 2, kind: input, shape index: {}]   ;;  %s143_s3 = inlined_call_operand.vmem [shape: f32[16,32], index: 3, kind: output, shape index: {}]  }
   0x1   :  { %v14_v0 = vld [vmem:[%s140_s0] sm:$0xff]  ;;  %v15_v2 = vld [vmem:[%s140_s0 + $0x8] sm:$0xff]  ;;  %89 = vrcp.f32 %v95_v4 }
   0x2   :  { %v17_v1 = vsel %vm16_vm0, %v14_v0, 0.0  ;;  %v20_v3 = vsel %vm16_vm0, %v15_v2, 0.0  ;;  %v87_v35 = vld [vmem:[%s141_s1] ss:$0 sm:$0xff] }
   0x3   :  { %18 = vadd.xlane.f32.xlu0 %v17_v1  ;;  %v88_v38 = vld [vmem:[%s142_s2] ss:$0 sm:$0xff] }
   0x7   :  { %v90_v5 = vpop.eup %89 }
   0x8   :  { %v24_v6 = vmul.f32 32.0, %v90_v5  ;;  %vm28_vm1 = vweird.f32 %v90_v5 }
   0xa   :  { %v25_v7 = vsub.f32 1.0, %v24_v6 }
   0xb   :  { %21 = vadd.xlane.f32.xlu0 %v20_v3 }
   0xc   :  { %v26_v8 = vmul.f32 %v90_v5, %v25_v7 }
   0xe   :  { %v27_v9 = vadd.f32 %v90_v5, %v26_v8 }
  0x10   :  { %v29_v10 = vsel %vm28_vm1, %v90_v5, %v27_v9 }
  0x76   :  { %v19_v11 = vpop.xlane.xlu0 %18 }
  0x77   :  { %v30_v12 = vmul.f32 %v29_v10, %v19_v11 }
  0x79   :  { %v32_v13 = vsub.f32 %v14_v0, %v30_v12 }
  0x7b   :  { %v34_v14 = vmul.f32 %v32_v13, %v32_v13 }
  0x7d   :  { %v36_v15 = vsel %vm16_vm0, %v34_v14, 0.0 }
  0x7e   :  { %37 = vadd.xlane.f32.xlu1 %v36_v15  ;;  %v22_v16 = vpop.xlane.xlu0 %21 }
  0x7f   :  { %v31_v17 = vmul.f32 %v29_v10, %v22_v16 }
  0x81   :  { %v33_v18 = vsub.f32 %v15_v2, %v31_v17 }
  0x83   :  { %v35_v19 = vmul.f32 %v33_v18, %v33_v18 }
  0x85   :  { %v39_v20 = vsel %vm16_vm0, %v35_v19, 0.0 }
  0x86   :  { %40 = vadd.xlane.f32.xlu1 %v39_v20 }
  0xf1   :  { %v38_v21 = vpop.xlane.xlu1 %37 }
  0xf2   :  { %v42_v22 = vmul.f32 %v38_v21, %v29_v10 }
  0xf4   :  { %v44_v23 = vadd.f32 1e-05, %v42_v22 }
  0xf6   :  { %91 = vrsqrt.f32 %v44_v23  ;;  %vm52_vm3 = vweird.f32 %v44_v23 }
  0xf9   :  { %v41_v24 = vpop.xlane.xlu1 %40 }
  0xfa   :  { %v43_v25 = vmul.f32 %v41_v24, %v29_v10 }
  0xfc   :  { %v92_v26 = vpop.eup %91  ;;  %v45_v27 = vadd.f32 1e-05, %v43_v25 }
  0xfd   :  { %v47_v28 = vmul.f32 %v92_v26, %v44_v23  ;;  %vm53_vm2 = vweird.f32 %v92_v26 }
  0xfe   :  { %93 = vrsqrt.f32 %v45_v27  ;;  %vm54_vm4 = vmor %vm52_vm3, %vm53_vm2  ;;  %vm62_vm6 = vweird.f32 %v45_v27 }
  0xff   :  { %v48_v29 = vmul.f32 %v92_v26, %v47_v28 }
 0x101   :  { %v49_v30 = vmul.f32 0.5, %v48_v29 }
 0x103   :  { %v50_v31 = vsub.f32 1.5, %v49_v30 }
 0x104   :  { %v94_v32 = vpop.eup %93 }
 0x105   :  { %v51_v33 = vmul.f32 %v92_v26, %v50_v31  ;;  %v57_v34 = vmul.f32 %v94_v32, %v45_v27  ;;  %vm63_vm5 = vweird.f32 %v94_v32 }
 0x106   :  { %vm64_vm7 = vmor %vm62_vm6, %vm63_vm5 }
 0x107   :  { %v55_v36 = vsel %vm54_vm4, %v92_v26, %v51_v33  ;;  %v58_v37 = vmul.f32 %v94_v32, %v57_v34 }
 0x108   :  { %v66_v39 = vmul.f32 %v55_v36, %v32_v13 }
 0x109   :  { %v59_v40 = vmul.f32 0.5, %v58_v37 }
 0x10a   :  { %v72_v41 = vmul.f32 %v87_v35, %v66_v39 }
 0x10b   :  { %v60_v42 = vsub.f32 1.5, %v59_v40 }
 0x10c   :  { %v78_v43 = vadd.f32 %v88_v38, %v72_v41 }
 0x10d   :  { %v61_v44 = vmul.f32 %v94_v32, %v60_v42 }
 0x10e   :  { %80 = vst.msk [vmem:[%s143_s3] sm:$0xff] %vm16_vm0, %v78_v43 }
 0x10f   :  { %v65_v45 = vsel %vm64_vm7, %v94_v32, %v61_v44 }
 0x110   :  { %v67_v46 = vmul.f32 %v65_v45, %v33_v18 }
 0x112   :  { %v73_v47 = vmul.f32 %v87_v35, %v67_v46 }
 0x114   :  { %v79_v48 = vadd.f32 %v88_v38, %v73_v47 }
 0x116   :  { %81 = vst.msk [vmem:[%s143_s3 + $0x8] sm:$0xff] %vm16_vm0, %v79_v48 }

// kernel: cross_transformer_forward.34
= control target key start
LH: loop header
LB: loop body
LE: loop exit
PB: predicated region body
PF: predicated region fallthrough
CT: control target
= control target key end

     0   :  { %s410_s12 = smov 0   ;;  %s445_s0 = inlined_call_operand.vmem [shape: f32[8,8,8], index: 0, kind: input, shape index: {}]   ;;  %s446_s1 = inlined_call_operand.vmem [shape: f32[8,8,8], index: 1, kind: input, shape index: {}]   ;;  %s447_s2 = inlined_call_operand.vmem [shape: f32[8,8,8], index: 2, kind: input, shape index: {}]   ;;  %s448_s3 = inlined_call_operand.vmem [shape: f32[8,8,8], index: 3, kind: output, shape index: {}]  }
   0x1 LB: > { %s356_s13 = sadd.s32 4294967295, %s388_s12   ;;  %p360_p0 = scmp.ge.s32.totalorder %s388_s12, 1  ;;  %s388_s12 = sphi %s410_s12, %s13_s12  }
   0x2   : > { %p154_p1 = scmp.lt.s32.totalorder %s388_s12, 9 }
   0x4   : > { %p155_p2 = pnand %p360_p0, %p154_p1 }
   0x5   : > { %p184_p3 = scmp.lt.s32.totalorder (!%p155_p2), %s356_s13, 7 }
   0x6   : > { %158 = sbr.rel (%p155_p2) target bundleno = 411 (0x19b), region = 32 }
   0xb   : > { %s450_s13 = smov (!%p184_p3, %s356_s13), 7  ;;  %vm203_vm0 = vcmask 64512  }
   0xc   : > { %s418_s14 = sshll.u32 %s450_s13, 3 }
   0xd   : > { %s191_s17 = scalar_lea.vmem %s446_s1, %s418_s14  ;;  %s187_s20 = scalar_lea.vmem %s445_s0, %s418_s14 }
   0xe   : > { %v201_v0 = vld [vmem:[%s191_s17] sm:$0xff]  ;;  %s195_s23 = scalar_lea.vmem %s447_s2, %s418_s14  ;;  %s199_s26 = scalar_lea.vmem %s448_s3, %s418_s14 }
   0xf   : > { %365 = vmatpush.xpose.msk.msra.mxu0 %vm203_vm0, %v201_v0  ;;  %v200_v1 = vld [vmem:[%s187_s20] sm:$0xff] }
  0x10   : > { %v202_v5 = vld [vmem:[%s195_s23] sm:$0xff] }
  0x11   : > { %258 = vmatpush.msra.mxu1 %v202_v5 }
  0x12   : > { %366 = vmatmul.msk.f32.vlgmr.msra.gmra.mxu0 %vm203_vm0, %v200_v1 }
  0x8f   : > { %v227_v2 = vpop.f32.mrf.mxu0 }
  0x90   : > { %v230_v3 = vmul.f32 0.35355338, %v227_v2 }
  0x92   : > { %v231_v4 = vsel %vm203_vm0, %v230_v3, -inf }
  0x93   : > { %232 = vmax.xlane.f32.xlu0 %v231_v4 }
 0x106   : > { %v233_v6 = vpop.xlane.xlu0 %232 }
 0x107   : > { %v234_v7 = vsub.f32 %v230_v3, %v233_v6 }
 0x109   : > { %v235_v8 = vmul.f32 1.442695, %v234_v7 }
 0x10b   : > { %378 = vpow2.f32 %v235_v8 }
 0x111   : > { %v379_v9 = vpop.eup %378 }
 0x112   : > { %367 = vmatmul.msk.f32.vlgmr.msra.gmra.mxu1 %vm203_vm0, %v379_v9  ;;  %v237_v10 = vsel %vm203_vm0, %v379_v9, 0.0 }
 0x113   : > { %238 = vadd.xlane.f32.xlu0 %v237_v10 }
 0x186   : > { %v239_v11 = vpop.xlane.xlu0 %238 }
 0x187   : > { %380 = vrcp.f32 %v239_v11  ;;  %v274_v15 = vand.u32 2147483648, %v239_v11  ;;  %v272_v17 = vand.u32 2147483647, %v239_v11  ;;  %vm268_vm2 = vweird.f32 %v239_v11 }
 0x189   : > { %v275_v19 = vor.u32 1.1754944e-38, %v274_v15  ;;  %vm273_vm4 = vcmp.eq.f32.partialorder %v272_v17, 8.507059e+37 }
 0x18d   : > { %v381_v12 = vpop.eup %380 }
 0x18e   : > { %v264_v13 = vmul.f32 %v381_v12, %v239_v11  ;;  %vm269_vm1 = vweird.f32 %v381_v12 }
 0x18f   : > { %vm270_vm3 = vmor %vm268_vm2, %vm269_vm1  ;;  %v260_v21 = vpop.f32.mrf.mxu1 }
 0x190   : > { %v265_v14 = vsub.f32 1.0, %v264_v13 }
 0x192   : > { %v266_v16 = vmul.f32 %v381_v12, %v265_v14 }
 0x194   : > { %v267_v18 = vadd.f32 %v381_v12, %v266_v16 }
 0x196   : > { %v271_v20 = vsel %vm270_vm3, %v381_v12, %v267_v18 }
 0x197   : > { %v276_v22 = vsel %vm273_vm4, %v275_v19, %v271_v20 }
 0x198   : > { %v277_v23 = vmul.f32 %v276_v22, %v260_v21 }
 0x19a   : > { %278 = vst.msk [vmem:[%s199_s26] sm:$0xff] %vm203_vm0, %v277_v23 }
 0x19b PF: > { %s13_s12 = sadd.s32 1, %s388_s12  }
 0x19c   : > { %p10_p4 = scmp.ge.s32.totalorder %s13_s12, 10  }
 0x19e   :  { %12 = sbr.rel (!%p10_p4) target bundleno = 1 (0x1), region = 68 }

// kernel: cross_transformer_forward.37
= control target key start
LH: loop header
LB: loop body
LE: loop exit
PB: predicated region body
PF: predicated region fallthrough
CT: control target
= control target key end

     0   :  { %vm24_vm0 = vcmask 261120   ;;  %vm72_vm1 = vcmask 523264   ;;  %s137_s1 = inlined_call_operand.vmem [shape: f32[32,64], index: 1, kind: input, shape index: {}]   ;;  %s138_s2 = inlined_call_operand.vmem [shape: f32[1,64], index: 2, kind: input, shape index: {}]   ;;  %s139_s0 = inlined_call_operand.vmem [shape: f32[16,32], index: 0, kind: input, shape index: {}]   ;;  %s140_s3 = inlined_call_operand.vmem [shape: f32[16,64], index: 3, kind: output, shape index: {}]  }
   0x1   :  { %v19_v0 = vld [vmem:[%s137_s1 + $0x18] sm:$0xff]  ;;  %v18_v1 = vld [vmem:[%s137_s1 + $0x10] sm:$0xff]  ;;  %v17_v2 = vld [vmem:[%s137_s1 + $0x8] sm:$0xff] }
   0x2   :  { %43 = vmatpush.msra.mxu0 %v19_v0  ;;  %81 = vmatpush.msra.mxu1 %v19_v0  ;;  %v16_v3 = vld [vmem:[%s137_s1] sm:$0xff]  ;;  %v15_v5 = vld [vmem:[%s139_s0 + $0x8] sm:$0xff] }
   0x3   :  { %v14_v4 = vld [vmem:[%s139_s0] sm:$0xff] }
   0x4   :  { %44 = vmatpush.msra.mxu0 %v18_v1  ;;  %82 = vmatpush.msra.mxu1 %v18_v1  ;;  %v85_v6 = vld [vmem:[%s138_s2] ss:$0 sm:$0xff] }
   0x6   :  { %45 = vmatpush.msra.mxu0 %v17_v2  ;;  %83 = vmatpush.msra.mxu1 %v17_v2 }
   0x8   :  { %46 = vmatpush.msra.mxu0 %v16_v3  ;;  %84 = vmatpush.msra.mxu1 %v16_v3 }
   0x9   :  { %79 = vmatmul.msk.f32.vlgmr.msra.gmra.mxu0 %vm24_vm0, %v14_v4  ;;  %80 = vmatmul.msk.f32.vlgmr.msra.gmra.mxu1 %vm24_vm0, %v15_v5 }
  0x86   :  { %v48_v7 = vpop.f32.mrf.mxu0  ;;  %v51_v8 = vpop.f32.mrf.mxu1 }
  0x87   :  { %v49_v9 = vadd.f32 %v85_v6, %v48_v7  ;;  %v52_v10 = vadd.f32 %v85_v6, %v51_v8 }
  0x89   :  { %v56_v11 = vmul.f32 0.044715, %v49_v9  ;;  %v57_v12 = vmul.f32 0.044715, %v52_v10  ;;  %v54_v23 = vmul.f32 0.5, %v49_v9  ;;  %v55_v25 = vmul.f32 0.5, %v52_v10 }
  0x8b   :  { %v58_v13 = vmul.f32 %v56_v11, %v49_v9  ;;  %v59_v14 = vmul.f32 %v57_v12, %v52_v10 }
  0x8d   :  { %v60_v15 = vmul.f32 %v58_v13, %v49_v9  ;;  %v61_v16 = vmul.f32 %v59_v14, %v52_v10 }
  0x8f   :  { %v62_v17 = vadd.f32 %v60_v15, %v49_v9  ;;  %v63_v18 = vadd.f32 %v61_v16, %v52_v10 }
  0x91   :  { %v64_v19 = vmul.f32 0.7978846, %v62_v17  ;;  %v65_v20 = vmul.f32 0.7978846, %v63_v18 }
  0x93   :  { %86 = vtanh.f32 %v64_v19 }
  0x94   :  { %88 = vtanh.f32 %v65_v20 }
  0x99   :  { %v87_v21 = vpop.eup %86 }
  0x9a   :  { %v89_v22 = vpop.eup %88  ;;  %v68_v24 = vadd.f32 1.0, %v87_v21 }
  0x9b   :  { %v69_v26 = vadd.f32 1.0, %v89_v22 }
  0x9c   :  { %v70_v27 = vmul.f32 %v68_v24, %v54_v23 }
  0x9d   :  { %v71_v28 = vmul.f32 %v69_v26, %v55_v25 }
  0x9e   :  { %73 = vst.msk [vmem:[%s140_s3] sm:$0xff] %vm72_vm1, %v70_v27 }
  0x9f   :  { %74 = vst.msk [vmem:[%s140_s3 + $0x8] sm:$0xff] %vm72_vm1, %v71_v28 }

// kernel: cross_transformer_forward.38
= control target key start
LH: loop header
LB: loop body
LE: loop exit
PB: predicated region body
PF: predicated region fallthrough
CT: control target
= control target key end

     0   :  { %vm31_vm0 = vcmask 523264   ;;  %vm65_vm1 = vcmask 261120   ;;  %s153_s1 = inlined_call_operand.vmem [shape: f32[64,32], index: 1, kind: input, shape index: {}]   ;;  %s154_s2 = inlined_call_operand.vmem [shape: f32[1,32], index: 2, kind: input, shape index: {}]   ;;  %s155_s0 = inlined_call_operand.vmem [shape: f32[16,64], index: 0, kind: input, shape index: {}]   ;;  %s156_s3 = inlined_call_operand.vmem [shape: f32[16,32], index: 3, kind: input, shape index: {}]   ;;  %s157_s4 = inlined_call_operand.vmem [shape: f32[16,32], index: 4, kind: output, shape index: {}]  }
   0x1   :  { %v26_v0 = vld [vmem:[%s153_s1 + $0x38] sm:$0xff]  ;;  %v25_v1 = vld [vmem:[%s153_s1 + $0x30] sm:$0xff]  ;;  %v24_v2 = vld [vmem:[%s153_s1 + $0x28] sm:$0xff] }
   0x2   :  { %46 = vmatpush.msra.mxu0 %v26_v0  ;;  %74 = vmatpush.msra.mxu1 %v26_v0  ;;  %v23_v3 = vld [vmem:[%s153_s1 + $0x20] sm:$0xff]  ;;  %v22_v4 = vld [vmem:[%s153_s1 + $0x18] sm:$0xff]  ;;  %v21_v5 = vld [vmem:[%s153_s1 + $0x10] sm:$0xff] }
   0x3   :  { %v20_v6 = vld [vmem:[%s153_s1 + $0x8] sm:$0xff]  ;;  %v19_v7 = vld [vmem:[%s153_s1] sm:$0xff] }
   0x4   :  { %47 = vmatpush.msra.mxu0 %v25_v1  ;;  %75 = vmatpush.msra.mxu1 %v25_v1  ;;  %v17_v8 = vld [vmem:[%s155_s0] sm:$0xff]  ;;  %v18_v9 = vld [vmem:[%s155_s0 + $0x8] sm:$0xff] }
   0x5   :  { %v82_v10 = vld [vmem:[%s154_s2] ss:$0 sm:$0xff]  ;;  %v62_v14 = vld [vmem:[%s156_s3 + $0x8] sm:$0xff] }
   0x6   :  { %48 = vmatpush.msra.mxu0 %v24_v2  ;;  %76 = vmatpush.msra.mxu1 %v24_v2  ;;  %v61_v12 = vld [vmem:[%s156_s3] sm:$0xff] }
   0x8   :  { %49 = vmatpush.msra.mxu0 %v23_v3  ;;  %77 = vmatpush.msra.mxu1 %v23_v3 }
   0xa   :  { %50 = vmatpush.msra.mxu0 %v22_v4  ;;  %78 = vmatpush.msra.mxu1 %v22_v4 }
   0xc   :  { %51 = vmatpush.msra.mxu0 %v21_v5  ;;  %79 = vmatpush.msra.mxu1 %v21_v5 }
   0xe   :  { %52 = vmatpush.msra.mxu0 %v20_v6  ;;  %80 = vmatpush.msra.mxu1 %v20_v6 }
  0x10   :  { %53 = vmatpush.msra.mxu0 %v19_v7  ;;  %81 = vmatpush.msra.mxu1 %v19_v7 }
  0x11   :  { %72 = vmatmul.msk.f32.vlgmr.msra.gmra.mxu0 %vm31_vm0, %v17_v8  ;;  %73 = vmatmul.msk.f32.vlgmr.msra.gmra.mxu1 %vm31_vm0, %v18_v9 }
  0x8e   :  { %v55_v11 = vpop.f32.mrf.mxu0  ;;  %v58_v13 = vpop.f32.mrf.mxu1 }
  0x8f   :  { %v56_v15 = vadd.f32 %v82_v10, %v55_v11  ;;  %v59_v16 = vadd.f32 %v82_v10, %v58_v13 }
  0x91   :  { %v63_v17 = vadd.f32 %v61_v12, %v56_v15  ;;  %v64_v18 = vadd.f32 %v62_v14, %v59_v16 }
  0x93   :  { %66 = vst.msk [vmem:[%s157_s4] sm:$0xff] %vm65_vm1, %v63_v17 }
  0x94   :  { %67 = vst.msk [vmem:[%s157_s4 + $0x8] sm:$0xff] %vm65_vm1, %v64_v18 }

// kernel: cross_transformer_forward.55
= control target key start
LH: loop header
LB: loop body
LE: loop exit
PB: predicated region body
PF: predicated region fallthrough
CT: control target
= control target key end

     0   :  { %vm17_vm0 = vcmask 261120   ;;  %s98_s1 = inlined_call_operand.vmem [shape: f32[32,32], index: 1, kind: input, shape index: {}]   ;;  %s99_s0 = inlined_call_operand.vmem [shape: f32[16,32], index: 0, kind: input, shape index: {}]   ;;  %s100_s2 = inlined_call_operand.vmem [shape: f32[16,32], index: 2, kind: output, shape index: {}]  }
   0x1   :  { %v16_v0 = vld [vmem:[%s98_s1 + $0x18] sm:$0xff]  ;;  %v15_v1 = vld [vmem:[%s98_s1 + $0x10] sm:$0xff]  ;;  %v14_v2 = vld [vmem:[%s98_s1 + $0x8] sm:$0xff] }
   0x2   :  { %36 = vmatpush.msra.mxu0 %v16_v0  ;;  %55 = vmatpush.msra.mxu1 %v16_v0  ;;  %v13_v3 = vld [vmem:[%s98_s1] sm:$0xff]  ;;  %v12_v5 = vld [vmem:[%s99_s0 + $0x8] sm:$0xff] }
   0x3   :  { %v11_v4 = vld [vmem:[%s99_s0] sm:$0xff] }
   0x4   :  { %37 = vmatpush.msra.mxu0 %v15_v1  ;;  %56 = vmatpush.msra.mxu1 %v15_v1 }
   0x6   :  { %38 = vmatpush.msra.mxu0 %v14_v2  ;;  %57 = vmatpush.msra.mxu1 %v14_v2 }
   0x8   :  { %39 = vmatpush.msra.mxu0 %v13_v3  ;;  %58 = vmatpush.msra.mxu1 %v13_v3 }
   0x9   :  { %53 = vmatmul.msk.f32.vlgmr.msra.gmra.mxu0 %vm17_vm0, %v11_v4  ;;  %54 = vmatmul.msk.f32.vlgmr.msra.gmra.mxu1 %vm17_vm0, %v12_v5 }
  0x86   :  { %v41_v6 = vpop.f32.mrf.mxu0  ;;  %v44_v7 = vpop.f32.mrf.mxu1 }
  0x87   :  { %47 = vst.msk [vmem:[%s100_s2] sm:$0xff] %vm17_vm0, %v41_v6 }
  0x88   :  { %48 = vst.msk [vmem:[%s100_s2 + $0x8] sm:$0xff] %vm17_vm0, %v44_v7 }

// kernel: cross_transformer_forward.61
= control target key start
LH: loop header
LB: loop body
LE: loop exit
PB: predicated region body
PF: predicated region fallthrough
CT: control target
= control target key end

     0   :  { %s197_s0 = inlined_call_operand.vmem [shape: f32[16,64], index: 0, kind: input, shape index: {}]   ;;  %s198_s1 = inlined_call_operand.vmem [shape: f32[64,32], index: 1, kind: input, shape index: {}]   ;;  %s199_s2 = inlined_call_operand.vmem [shape: f32[1,32], index: 2, kind: input, shape index: {}]   ;;  %s200_s3 = inlined_call_operand.vmem [shape: f32[16,32], index: 3, kind: input, shape index: {}]   ;;  %s201_s4 = inlined_call_operand.hbm [shape: f32[16,32], index: 4, kind: output, shape index: {}]  }
   0x1   :  { %v27_v0 = vld [vmem:[%s198_s1 + $0x38] sm:$0xff]  ;;  %v26_v1 = vld [vmem:[%s198_s1 + $0x30] sm:$0xff]  ;;  %v25_v2 = vld [vmem:[%s198_s1 + $0x28] sm:$0xff] }
   0x2   :  { %47 = vmatpush.msra.mxu0 %v27_v0  ;;  %89 = vmatpush.msra.mxu1 %v27_v0  ;;  %v24_v3 = vld [vmem:[%s198_s1 + $0x20] sm:$0xff] }
   0x4   :  { %48 = vmatpush.msra.mxu0 %v26_v1  ;;  %90 = vmatpush.msra.mxu1 %v26_v1 }
   0x5   :  { %9 = vsyncpa [#allocation3], 0  ;;  %v23_v4 = vld [vmem:[%s198_s1 + $0x18] sm:$0xff]  ;;  %v22_v5 = vld [vmem:[%s198_s1 + $0x10] sm:$0xff]  ;;  %vm32_vm0 = vcmask 523264   ;;  %s127_s14 = smov [#allocation2]  }
   0x6   :  { %49 = vmatpush.msra.mxu0 %v25_v2  ;;  %91 = vmatpush.msra.mxu1 %v25_v2  ;;  %v21_v6 = vld [vmem:[%s198_s1 + $0x8] sm:$0xff]  ;;  %v20_v7 = vld [vmem:[%s198_s1] sm:$0xff]  ;;  %s75_s17 = sshll.u32 %s201_s4, 4  ;;  %vm66_vm1 = vcmask 261120   ;;  %s129_s18 = smov 8   ;;  %s76_s17 = int_to_ptr.hbm [resolvable:$true] %s75_s17 }
   0x7   :  { %v18_v8 = vld [vmem:[%s197_s0] sm:$0xff]  ;;  %v19_v9 = vld [vmem:[%s197_s0 + $0x8] sm:$0xff]  ;;  %s73_s0 = sshll.u32 %s127_s14, 4  ;;  %s74_s0 = int_to_ptr.vmem [resolvable:$true] %s73_s0 }
   0x8   :  { %50 = vmatpush.msra.mxu0 %v24_v3  ;;  %92 = vmatpush.msra.mxu1 %v24_v3  ;;  %v100_v10 = vld [vmem:[%s199_s2] ss:$0 sm:$0xff]  ;;  %v63_v14 = vld [vmem:[%s200_s3 + $0x8] sm:$0xff]  ;;  %s128_s2 = smov 128  }
   0x9   :  { %v62_v12 = vld [vmem:[%s200_s3] sm:$0xff] }
   0xa   :  { %51 = vmatpush.msra.mxu0 %v23_v4  ;;  %93 = vmatpush.msra.mxu1 %v23_v4 }
   0xc   :  { %52 = vmatpush.msra.mxu0 %v22_v5  ;;  %94 = vmatpush.msra.mxu1 %v22_v5 }
   0xe   :  { %53 = vmatpush.msra.mxu0 %v21_v6  ;;  %95 = vmatpush.msra.mxu1 %v21_v6 }
  0x10   :  { %54 = vmatpush.msra.mxu0 %v20_v7  ;;  %96 = vmatpush.msra.mxu1 %v20_v7 }
  0x11   :  { %87 = vmatmul.msk.f32.vlgmr.msra.gmra.mxu0 %vm32_vm0, %v18_v8  ;;  %88 = vmatmul.msk.f32.vlgmr.msra.gmra.mxu1 %vm32_vm0, %v19_v9 }
  0x8e   :  { %v56_v11 = vpop.f32.mrf.mxu0  ;;  %v59_v13 = vpop.f32.mrf.mxu1 }
  0x8f   :  { %v57_v15 = vadd.f32 %v100_v10, %v56_v11  ;;  %v60_v16 = vadd.f32 %v100_v10, %v59_v13 }
  0x91   :  { %v64_v17 = vadd.f32 %v62_v12, %v57_v15  ;;  %v65_v18 = vadd.f32 %v63_v14, %v60_v16 }
  0x93   :  { %67 = vst.msk [vmem:[#allocation2] sm:$0xff] %vm66_vm1, %v64_v17 }
  0x94   :  { %68 = vst.msk [vmem:[#allocation2 + $0x8] sm:$0xff] %vm66_vm1, %v65_v18 }
  0x95   :  { %81 = dma.vmem_to_hbm [thread:$0]  %s74_s0, 256, %s76_s17, [#allocation3], %s128_s2, %s128_s2, %s129_s18  }
  0x96   :  { %125 = dma.done.wait [#allocation3], 256  }
  0x97   :  { %126 = vsyncadd [#allocation3], 4294967040 }
  0x98   :  { %86 = vsyncpa [#allocation3], 1 }

</bundles_post_ra>
